<compile_context>
chip_gen: v7x
topology: tpu7x:2x2x1
jax: 0.10.0
libtpu: 0.0.40
codegen_flags: <defaults>
</compile_context>

<pallas_src>
import functools

import jax
import jax.numpy as jnp
from jax.experimental import pallas as pl
from jax.experimental.pallas import tpu as pltpu

F_PAD = 128          # lane-dense feature width (vreg lane count)
_LN_EPS = 1e-5       # torch.nn.LayerNorm default eps


def _gcn_fused_kernel(adj_ref, h0_ref, w_ref, b_ref, gamma_ref, beta_ref,
                      slope_ref, o_ref, *, f_outs, mm_dtype):
    """All GCN layers fused: ((A_hat @ h) @ W + b) -> LayerNorm -> PReLU."""
    adj = adj_ref[...]                       # (N, N), mm_dtype
    h = h0_ref[...]                          # (N, F_PAD), f32 (padded lanes 0)
    lane = jax.lax.broadcasted_iota(jnp.int32, (1, F_PAD), 1)
    for l, f_out in enumerate(f_outs):
        # Aggregate over neighbours, then project (both on MXU, f32 accum).
        ah = jnp.dot(adj, h.astype(mm_dtype),
                     preferred_element_type=jnp.float32)
        z = jnp.dot(ah.astype(mm_dtype), w_ref[l],
                    preferred_element_type=jnp.float32)
        z = z + b_ref[l:l + 1, :]            # GraphConv bias (padded lanes 0)
        # LayerNorm over the real f_out lanes.  Padded lanes of z are exactly
        # zero, so plain lane sums / f_out give the true mean.  The variance
        # uses the CENTERED form E[(z-mean)^2] (numerically stable); the
        # padded lanes must be masked since z-mean is nonzero there.
        inv_f = 1.0 / float(f_out)
        mean = jnp.sum(z, axis=-1, keepdims=True) * inv_f
        zc = jnp.where(lane < f_out, z - mean, 0.0)
        var = jnp.sum(zc * zc, axis=-1, keepdims=True) * inv_f
        zn = zc * jax.lax.rsqrt(var + _LN_EPS)
        zn = zn * gamma_ref[l:l + 1, :] + beta_ref[l:l + 1, :]
        # PReLU with a single learned slope per layer, read from SMEM.
        a = slope_ref[l]
        h = jnp.where(zn >= 0, zn, a * zn)   # padded lanes stay exactly 0
        # dropout between layers is identity in eval mode.
    o_ref[...] = h.astype(o_ref.dtype)


def _pad_to(x, rows, cols):
    out = jnp.zeros((rows, cols), x.dtype)
    return out.at[:x.shape[0], :x.shape[1]].set(x)


def _vmem_capacity_bytes():
    try:
        return int(pltpu.get_tpu_info().vmem_capacity_bytes)
    except Exception:
        return 64 << 20   # conservative: v7x per-TensorCore VMEM


def gcn_forward(adj_hat, features, params, *, mm_dtype=jnp.bfloat16):
    """Fused GCN forward.  params = [(W, b, gamma, beta, prelu_a), ...]."""
    n, in_feats = features.shape
    assert adj_hat.shape == (n, n)
    f_outs = tuple(int(w.shape[1]) for (w, *_rest) in params)
    num_layers = len(params)
    assert in_feats <= F_PAD and all(f <= F_PAD for f in f_outs)

    if adj_hat.dtype != mm_dtype:
        # Callers should materialize A_hat in mm_dtype once, outside the hot
        # path; doing the cast here costs an extra ~6*N^2 bytes of HBM traffic
        # per forward call.
        adj_hat = adj_hat.astype(mm_dtype)

    # Zero-pad feature dims to 128 lanes and stack per-layer parameters.
    h0 = _pad_to(features.astype(jnp.float32), n, F_PAD)
    w_stack = jnp.stack([_pad_to(w.astype(jnp.float32), F_PAD, F_PAD)
                         for (w, *_rest) in params]).astype(mm_dtype)
    b_stack = jnp.stack([_pad_to(b.reshape(1, -1), 1, F_PAD)[0]
                         for (_, b, *_rest) in params])
    gamma_stack = jnp.stack([_pad_to(g.reshape(1, -1), 1, F_PAD)[0]
                             for (_, _, g, *_rest) in params])
    beta_stack = jnp.stack([_pad_to(bt.reshape(1, -1), 1, F_PAD)[0]
                            for (_, _, _, bt, _) in params])
    slopes = jnp.concatenate([a.reshape(1).astype(jnp.float32)
                              for (*_rest, a) in params])

    mm_bytes = jnp.dtype(mm_dtype).itemsize
    # VMEM footprint: gridless call => every operand is whole-array resident
    # and SINGLE buffered (no pipeline buffers), plus in-kernel f32 temps.
    resident = (n * n * mm_bytes                       # adjacency
                + 2 * n * F_PAD * 4                    # h0 + output
                + num_layers * F_PAD * F_PAD * mm_bytes  # W stack
                + 3 * num_layers * F_PAD * 4)          # b/gamma/beta stacks
    temporaries = 6 * n * F_PAD * 4                    # ah/z/zc/zn/h live f32
    footprint = resident + temporaries
    vmem_cap = _vmem_capacity_bytes()
    if footprint + (4 << 20) > vmem_cap:
        # TODO(synk): fall back to the per-layer, row-tiled "parallel" path
        # described in the header once graphs exceed VMEM (earlier on v7x).
        raise NotImplementedError(
            f"graph with {n} nodes needs {footprint} B VMEM-resident "
            f"(> {vmem_cap} B); row-tiled path not implemented")
    vmem_limit = int(min(max(2 * footprint + (8 << 20), 32 << 20), vmem_cap))

    kernel = functools.partial(_gcn_fused_kernel, f_outs=f_outs,
                               mm_dtype=mm_dtype)
    cost = pl.CostEstimate(
        flops=num_layers * (2 * n * n * F_PAD + 2 * n * F_PAD * F_PAD),
        transcendentals=num_layers * n,
        bytes_accessed=(n * n * mm_bytes                 # adjacency
                        + n * F_PAD * 4                  # input features
                        + num_layers * F_PAD * F_PAD * mm_bytes
                        + 3 * num_layers * F_PAD * 4
                        + num_layers * 4
                        + n * F_PAD * 4))                # output

    vmem = pltpu.MemorySpace.VMEM
    out_padded = pl.pallas_call(
        kernel,
        out_shape=jax.ShapeDtypeStruct((n, F_PAD), jnp.float32),
        in_specs=[
            pl.BlockSpec(memory_space=vmem),                      # A_hat
            pl.BlockSpec(memory_space=vmem),                      # h0
            pl.BlockSpec(memory_space=vmem),                      # W stack
            pl.BlockSpec(memory_space=vmem),                      # bias stack
            pl.BlockSpec(memory_space=vmem),                      # gamma stack
            pl.BlockSpec(memory_space=vmem),                      # beta stack
            pl.BlockSpec(memory_space=pltpu.MemorySpace.SMEM),    # PReLU a
        ],
        out_specs=pl.BlockSpec(memory_space=vmem),
        compiler_params=pltpu.CompilerParams(vmem_limit_bytes=vmem_limit),
        cost_estimate=cost,
    )(adj_hat, h0, w_stack, b_stack, gamma_stack, beta_stack, slopes)
    return out_padded[:, :f_outs[-1]]


def gcn_reference(adj_hat, features, params, mm_dtype=jnp.bfloat16):
    """Pure-JAX reference mirroring the kernel's mixed-precision math."""
    adj = adj_hat.astype(mm_dtype)
    h = features.astype(jnp.float32)
    for (w, b, gamma, beta, a) in params:
        ah = jnp.dot(adj, h.astype(mm_dtype),
                     preferred_element_type=jnp.float32)
        z = jnp.dot(ah.astype(mm_dtype), w.astype(mm_dtype),
                    preferred_element_type=jnp.float32) + b
        mean = jnp.mean(z, axis=-1, keepdims=True)
        var = jnp.mean((z - mean) ** 2, axis=-1, keepdims=True)
        zn = (z - mean) * jax.lax.rsqrt(var + _LN_EPS) * gamma + beta
        h = jnp.where(zn >= 0, zn, a * zn)
    return h


def gcn_reference_f32(adj_hat_f32, features, params):
    """Full-f32 baseline matching the original DGL GraphConv/LayerNorm math."""
    h = features.astype(jnp.float32)
    for (w, b, gamma, beta, a) in params:
        z = adj_hat_f32 @ h @ w + b
        mean = jnp.mean(z, axis=-1, keepdims=True)
        var = jnp.mean((z - mean) ** 2, axis=-1, keepdims=True)
        zn = (z - mean) * jax.lax.rsqrt(var + _LN_EPS) * gamma + beta
        h = jnp.where(zn >= 0, zn, a * zn)
    return h


def xavier_uniform(key, fan_in, fan_out):
    limit = jnp.sqrt(6.0 / (fan_in + fan_out))
    return jax.random.uniform(key, (fan_in, fan_out), jnp.float32,
                              -limit, limit)


def build_normalized_adjacency(key, n):
    """Dense symmetric adjacency, DGL norm='both': D^{-1/2} A D^{-1/2}."""
    a = (jax.random.uniform(key, (n, n)) < 0.1).astype(jnp.float32)
    a = jnp.maximum(a, a.T)                        # symmetric (undirected)
    a = a * (1.0 - jnp.eye(n, dtype=jnp.float32))  # no self loops
    deg = jnp.maximum(jnp.sum(a, axis=1), 1.0)     # clamp(min=1) as in DGL
    d_inv_sqrt = deg ** -0.5
    return (d_inv_sqrt[:, None] * a) * d_inv_sqrt[None, :]


if __name__ == "__main__":
    key = jax.random.PRNGKey(0)
    k_adj, k_feat, *k_w = jax.random.split(key, 2 + 4)

    # Shapes consistent with the module: N nodes = 128 (full MXU/vreg rows),
    # in_feats = 16, hidden_lst = [32, 16].
    n_nodes = 128
    in_feats = 16
    hidden_lst = [32, 16]

    adj_hat_f32 = build_normalized_adjacency(k_adj, n_nodes)
    # Materialize A_hat in the MXU dtype ONCE, outside the forward pass, so no
    # per-call f32->bf16 cast round-trips HBM before the kernel reads it.
    adj_hat = adj_hat_f32.astype(jnp.bfloat16)
    features = jax.random.normal(k_feat, (n_nodes, in_feats), jnp.float32)

    dims = [in_feats] + hidden_lst
    params = []
    for li, (f_in, f_out) in enumerate(zip(dims[:-1], dims[1:])):
        w = xavier_uniform(k_w[li], f_in, f_out)        # GraphConv weight
        b = jnp.zeros((1, f_out), jnp.float32)          # GraphConv bias
        gamma = jnp.ones((1, f_out), jnp.float32)       # LayerNorm weight
        beta = jnp.zeros((1, f_out), jnp.float32)       # LayerNorm bias
        a = jnp.full((1, 1), 0.25, jnp.float32)         # PReLU slope
        params.append((w, b, gamma, beta, a))

    fwd = jax.jit(gcn_forward)
    out = fwd(adj_hat, features, params)
    jax.block_until_ready(out)

    assert out.shape == (n_nodes, hidden_lst[-1])
    assert out.dtype == jnp.float32

    # Tight check vs. a reference mirroring the kernel's mixed precision.
    ref = gcn_reference(adj_hat, features, params)
    err_mixed = float(jnp.max(jnp.abs(out - ref)))
    assert jnp.allclose(out, ref, atol=2e-3, rtol=2e-3), err_mixed

    # Loose check vs. the full-f32 baseline (original GraphConv math), which
    # bounds the error introduced by the bf16 MXU path.
    ref_f32 = gcn_reference_f32(adj_hat_f32, features, params)
    err_f32 = float(jnp.max(jnp.abs(out - ref_f32)))
    assert err_f32 < 0.2, err_f32

    print("KERNEL_OK")
</pallas_src>

<mosaic_0001>
module attributes {stable_mosaic.version = 11 : i64} {
  func.func @_gcn_fused_kernel(%arg0: memref<128x128xbf16, #tpu.memory_space<vmem>>, %arg1: memref<128x128xf32, #tpu.memory_space<vmem>>, %arg2: memref<2x128x128xbf16, #tpu.memory_space<vmem>>, %arg3: memref<2x128xf32, #tpu.memory_space<vmem>>, %arg4: memref<2x128xf32, #tpu.memory_space<vmem>>, %arg5: memref<2x128xf32, #tpu.memory_space<vmem>>, %arg6: memref<2xf32, #tpu.memory_space<smem>>, %arg7: memref<128x128xf32, #tpu.memory_space<vmem>>) attributes {dimension_semantics = [], scalar_prefetch = 0 : i64, scratch_operands = 0 : i64, tpu.core_type = #tpu.core_type<tc>} {
    %c0 = arith.constant 0 : index
    %c0_0 = arith.constant 0 : index
    %0 = vector.load %arg0[%c0, %c0_0] : memref<128x128xbf16, #tpu.memory_space<vmem>>, vector<128x128xbf16>
    %c0_1 = arith.constant 0 : index
    %c0_2 = arith.constant 0 : index
    %1 = vector.load %arg1[%c0_1, %c0_2] : memref<128x128xf32, #tpu.memory_space<vmem>>, vector<128x128xf32>
    %2 = tpu.iota {dimensions = array<i32: 1>} : vector<1x128xi32>
    %3 = arith.truncf %1 : vector<128x128xf32> to vector<128x128xbf16>
    %cst = arith.constant dense<0.000000e+00> : vector<128x128xf32>
    %4 = tpu.matmul %0, %3, %cst {dimension_numbers = #tpu.dot_dimension_numbers<[1], [0], [0], [1], [0, 0, 1, 1], [], []>} : vector<128x128xbf16>, vector<128x128xbf16>, vector<128x128xf32> -> vector<128x128xf32>
    %5 = arith.truncf %4 : vector<128x128xf32> to vector<128x128xbf16>
    %c0_3 = arith.constant 0 : index
    %c0_4 = arith.constant 0 : index
    %c0_5 = arith.constant 0 : index
    %6 = vector.load %arg2[%c0_3, %c0_4, %c0_5] : memref<2x128x128xbf16, #tpu.memory_space<vmem>>, vector<1x128x128xbf16>
    %7 = vector.shape_cast %6 : vector<1x128x128xbf16> to vector<128x128xbf16>
    %cst_6 = arith.constant dense<0.000000e+00> : vector<128x128xf32>
    %8 = tpu.matmul %5, %7, %cst_6 {dimension_numbers = #tpu.dot_dimension_numbers<[1], [0], [0], [1], [0, 0, 1, 1], [], []>} : vector<128x128xbf16>, vector<128x128xbf16>, vector<128x128xf32> -> vector<128x128xf32>
    %c0_7 = arith.constant 0 : index
    %c0_8 = arith.constant 0 : index
    %9 = vector.load %arg3[%c0_7, %c0_8] : memref<2x128xf32, #tpu.memory_space<vmem>>, vector<1x128xf32>
    %10 = vector.broadcast %9 : vector<1x128xf32> to vector<128x128xf32>
    %11 = arith.addf %8, %10 : vector<128x128xf32>
    %cst_9 = arith.constant dense<0.000000e+00> : vector<128xf32>
    %12 = vector.multi_reduction <add>, %11, %cst_9 [1] : vector<128x128xf32> to vector<128xf32>
    %13 = vector.shape_cast %12 : vector<128xf32> to vector<128x1xf32>
    %cst_10 = arith.constant 3.125000e-02 : f32
    %14 = vector.broadcast %cst_10 : f32 to vector<128x1xf32>
    %15 = arith.mulf %13, %14 : vector<128x1xf32>
    %c32_i32 = arith.constant 32 : i32
    %16 = vector.broadcast %c32_i32 : i32 to vector<1x128xi32>
    %17 = arith.cmpi slt, %2, %16 : vector<1x128xi32>
    %18 = vector.broadcast %15 : vector<128x1xf32> to vector<128x128xf32>
    %19 = arith.subf %11, %18 : vector<128x128xf32>
    %cst_11 = arith.constant 0.000000e+00 : f32
    %20 = vector.shape_cast %17 : vector<1x128xi1> to vector<1x128xi1>
    %21 = vector.broadcast %20 : vector<1x128xi1> to vector<128x128xi1>
    %22 = vector.broadcast %cst_11 : f32 to vector<128x128xf32>
    %23 = arith.select %21, %19, %22 : vector<128x128xi1>, vector<128x128xf32>
    %24 = arith.mulf %23, %23 : vector<128x128xf32>
    %cst_12 = arith.constant dense<0.000000e+00> : vector<128xf32>
    %25 = vector.multi_reduction <add>, %24, %cst_12 [1] : vector<128x128xf32> to vector<128xf32>
    %26 = vector.shape_cast %25 : vector<128xf32> to vector<128x1xf32>
    %cst_13 = arith.constant 3.125000e-02 : f32
    %27 = vector.broadcast %cst_13 : f32 to vector<128x1xf32>
    %28 = arith.mulf %26, %27 : vector<128x1xf32>
    %cst_14 = arith.constant 9.99999974E-6 : f32
    %29 = vector.broadcast %cst_14 : f32 to vector<128x1xf32>
    %30 = arith.addf %28, %29 : vector<128x1xf32>
    %31 = math.rsqrt %30 : vector<128x1xf32>
    %32 = vector.broadcast %31 : vector<128x1xf32> to vector<128x128xf32>
    %33 = arith.mulf %23, %32 : vector<128x128xf32>
    %c0_15 = arith.constant 0 : index
    %c0_16 = arith.constant 0 : index
    %34 = vector.load %arg4[%c0_15, %c0_16] : memref<2x128xf32, #tpu.memory_space<vmem>>, vector<1x128xf32>
    %35 = vector.broadcast %34 : vector<1x128xf32> to vector<128x128xf32>
    %36 = arith.mulf %33, %35 : vector<128x128xf32>
    %c0_17 = arith.constant 0 : index
    %c0_18 = arith.constant 0 : index
    %37 = vector.load %arg5[%c0_17, %c0_18] : memref<2x128xf32, #tpu.memory_space<vmem>>, vector<1x128xf32>
    %38 = vector.broadcast %37 : vector<1x128xf32> to vector<128x128xf32>
    %39 = arith.addf %36, %38 : vector<128x128xf32>
    %c0_19 = arith.constant 0 : index
    %40 = memref.load %arg6[%c0_19] : memref<2xf32, #tpu.memory_space<smem>>
    %cst_20 = arith.constant 0.000000e+00 : f32
    %41 = vector.broadcast %cst_20 : f32 to vector<128x128xf32>
    %42 = arith.cmpf oge, %39, %41 : vector<128x128xf32>
    %43 = vector.broadcast %40 : f32 to vector<128x128xf32>
    %44 = arith.mulf %43, %39 : vector<128x128xf32>
    %45 = arith.select %42, %39, %44 : vector<128x128xi1>, vector<128x128xf32>
    %46 = arith.truncf %45 : vector<128x128xf32> to vector<128x128xbf16>
    %cst_21 = arith.constant dense<0.000000e+00> : vector<128x128xf32>
    %47 = tpu.matmul %0, %46, %cst_21 {dimension_numbers = #tpu.dot_dimension_numbers<[1], [0], [0], [1], [0, 0, 1, 1], [], []>} : vector<128x128xbf16>, vector<128x128xbf16>, vector<128x128xf32> -> vector<128x128xf32>
    %48 = arith.truncf %47 : vector<128x128xf32> to vector<128x128xbf16>
    %c1 = arith.constant 1 : index
    %c0_22 = arith.constant 0 : index
    %c0_23 = arith.constant 0 : index
    %49 = vector.load %arg2[%c1, %c0_22, %c0_23] : memref<2x128x128xbf16, #tpu.memory_space<vmem>>, vector<1x128x128xbf16>
    %50 = vector.shape_cast %49 : vector<1x128x128xbf16> to vector<128x128xbf16>
    %cst_24 = arith.constant dense<0.000000e+00> : vector<128x128xf32>
    %51 = tpu.matmul %48, %50, %cst_24 {dimension_numbers = #tpu.dot_dimension_numbers<[1], [0], [0], [1], [0, 0, 1, 1], [], []>} : vector<128x128xbf16>, vector<128x128xbf16>, vector<128x128xf32> -> vector<128x128xf32>
    %c1_25 = arith.constant 1 : index
    %c0_26 = arith.constant 0 : index
    %52 = vector.load %arg3[%c1_25, %c0_26] : memref<2x128xf32, #tpu.memory_space<vmem>>, vector<1x128xf32>
    %53 = vector.broadcast %52 : vector<1x128xf32> to vector<128x128xf32>
    %54 = arith.addf %51, %53 : vector<128x128xf32>
    %cst_27 = arith.constant dense<0.000000e+00> : vector<128xf32>
    %55 = vector.multi_reduction <add>, %54, %cst_27 [1] : vector<128x128xf32> to vector<128xf32>
    %56 = vector.shape_cast %55 : vector<128xf32> to vector<128x1xf32>
    %cst_28 = arith.constant 6.250000e-02 : f32
    %57 = vector.broadcast %cst_28 : f32 to vector<128x1xf32>
    %58 = arith.mulf %56, %57 : vector<128x1xf32>
    %c16_i32 = arith.constant 16 : i32
    %59 = vector.broadcast %c16_i32 : i32 to vector<1x128xi32>
    %60 = arith.cmpi slt, %2, %59 : vector<1x128xi32>
    %61 = vector.broadcast %58 : vector<128x1xf32> to vector<128x128xf32>
    %62 = arith.subf %54, %61 : vector<128x128xf32>
    %cst_29 = arith.constant 0.000000e+00 : f32
    %63 = vector.shape_cast %60 : vector<1x128xi1> to vector<1x128xi1>
    %64 = vector.broadcast %63 : vector<1x128xi1> to vector<128x128xi1>
    %65 = vector.broadcast %cst_29 : f32 to vector<128x128xf32>
    %66 = arith.select %64, %62, %65 : vector<128x128xi1>, vector<128x128xf32>
    %67 = arith.mulf %66, %66 : vector<128x128xf32>
    %cst_30 = arith.constant dense<0.000000e+00> : vector<128xf32>
    %68 = vector.multi_reduction <add>, %67, %cst_30 [1] : vector<128x128xf32> to vector<128xf32>
    %69 = vector.shape_cast %68 : vector<128xf32> to vector<128x1xf32>
    %cst_31 = arith.constant 6.250000e-02 : f32
    %70 = vector.broadcast %cst_31 : f32 to vector<128x1xf32>
    %71 = arith.mulf %69, %70 : vector<128x1xf32>
    %cst_32 = arith.constant 9.99999974E-6 : f32
    %72 = vector.broadcast %cst_32 : f32 to vector<128x1xf32>
    %73 = arith.addf %71, %72 : vector<128x1xf32>
    %74 = math.rsqrt %73 : vector<128x1xf32>
    %75 = vector.broadcast %74 : vector<128x1xf32> to vector<128x128xf32>
    %76 = arith.mulf %66, %75 : vector<128x128xf32>
    %c1_33 = arith.constant 1 : index
    %c0_34 = arith.constant 0 : index
    %77 = vector.load %arg4[%c1_33, %c0_34] : memref<2x128xf32, #tpu.memory_space<vmem>>, vector<1x128xf32>
    %78 = vector.broadcast %77 : vector<1x128xf32> to vector<128x128xf32>
    %79 = arith.mulf %76, %78 : vector<128x128xf32>
    %c1_35 = arith.constant 1 : index
    %c0_36 = arith.constant 0 : index
    %80 = vector.load %arg5[%c1_35, %c0_36] : memref<2x128xf32, #tpu.memory_space<vmem>>, vector<1x128xf32>
    %81 = vector.broadcast %80 : vector<1x128xf32> to vector<128x128xf32>
    %82 = arith.addf %79, %81 : vector<128x128xf32>
    %c1_37 = arith.constant 1 : index
    %83 = memref.load %arg6[%c1_37] : memref<2xf32, #tpu.memory_space<smem>>
    %cst_38 = arith.constant 0.000000e+00 : f32
    %84 = vector.broadcast %cst_38 : f32 to vector<128x128xf32>
    %85 = arith.cmpf oge, %82, %84 : vector<128x128xf32>
    %86 = vector.broadcast %83 : f32 to vector<128x128xf32>
    %87 = arith.mulf %86, %82 : vector<128x128xf32>
    %88 = arith.select %85, %82, %87 : vector<128x128xi1>, vector<128x128xf32>
    %c0_39 = arith.constant 0 : index
    %c0_40 = arith.constant 0 : index
    %89 = vector.load %arg7[%c0_39, %c0_40] : memref<128x128xf32, #tpu.memory_space<vmem>>, vector<128x128xf32>
    tpu.vector_store %arg7[%c0_39, %c0_40], %88 {strides = array<i32>} : memref<128x128xf32, #tpu.memory_space<vmem>>, vector<128x128xf32>,
    return
  }
}

</mosaic_0001>

<bundles_post_ra>
// kernel: gcn_forward.1
= control target key start
LH: loop header
LB: loop body
LE: loop exit
PB: predicated region body
PF: predicated region fallthrough
CT: control target
= control target key end

     0   :  { %12 = vsyncpa [#allocation3], 0  ;;  %s2322_s0 = inlined_call_operand.vmem [shape: bf16[128,128], index: 0, kind: input, shape index: {}]   ;;  %s2323_s1 = inlined_call_operand.vmem [shape: f32[128,128], index: 1, kind: input, shape index: {}]   ;;  %s2324_s2 = inlined_call_operand.vmem [shape: bf16[2,128,128], index: 2, kind: input, shape index: {}]   ;;  %s2325_s3 = inlined_call_operand.vmem [shape: f32[2,128], index: 3, kind: input, shape index: {}]   ;;  %s2326_s4 = inlined_call_operand.vmem [shape: f32[2,128], index: 4, kind: input, shape index: {}]   ;;  %s2327_s5 = inlined_call_operand.vmem [shape: f32[2,128], index: 5, kind: input, shape index: {}]   ;;  %s2328_s6 = inlined_call_operand.vmem [shape: f32[2], index: 6, kind: input, shape index: {}]   ;;  %s2329_s7 = inlined_call_operand.vmem [shape: f32[128,128], index: 7, kind: output, shape index: {}]  }
   0x1   :  { %s31_s26 = sshll.u32 %s2328_s6, 4  ;;  %s32_s26 = int_to_ptr.vmem [resolvable:$true] %s31_s26 }
   0x2   :  { %s1604_s27 = scalar_lea.vmem %s32_s26, 16  ;;  %p1609_p1 = scmp.lt.s32.totalorder %s32_s26, %s32_s26 }
   0x3   :  { %p1605_p0 = scmp.ne.s32.totalorder %s32_s26, %s1604_s27  ;;  %p1610_p2 = scmp.lt.s32.totalorder %s1604_s27, %s1604_s27 }
   0x5   :  { %p1611_p3 = por %p1610_p2, %p1609_p1 }
   0x7   :  { %p1612_p4 = pnand %p1611_p3, %p1605_p0 }
   0x9   :  { %1615 = shalt.err (!%p1612_p4)
}
   0xa   :  { %s1618_s28 = smov [#allocation2]  }
   0xb   :  { %34 = dma.vmem_to_smem %s32_s26, 16, %s1618_s28, [#allocation3]  }
   0xc   :  { %1616 = dma.done.wait [#allocation3], 16  }
   0xd   :  { %1617 = vsyncadd [#allocation3], 4294967280 }
   0xe   :  { %38 = sfence }
   0xf   :  { %v56_v0 = vld [vmem:[%s2323_s1] sm:$0xff]  ;;  %v57_v1 = vld [vmem:[%s2323_s1 + $0x8] sm:$0xff]  ;;  %v58_v2 = vld [vmem:[%s2323_s1 + $0x10] sm:$0xff]  ;;  %s638_s10 = sld [smem:[#allocation2]] }
  0x10   :  { %v74_v3 = vpack.c.bf16 %v57_v1, %v56_v0  ;;  %v59_v4 = vld [vmem:[%s2323_s1 + $0x18] sm:$0xff]  ;;  %v60_v6 = vld [vmem:[%s2323_s1 + $0x20] sm:$0xff]  ;;  %v61_v7 = vld [vmem:[%s2323_s1 + $0x28] sm:$0xff] }
  0x11   :  { %v75_v5 = vpack.c.bf16 %v59_v4, %v58_v2  ;;  %v62_v8 = vld [vmem:[%s2323_s1 + $0x30] sm:$0xff]  ;;  %v76_v9 = vpack.c.bf16 %v61_v7, %v60_v6  ;;  %v63_v10 = vld [vmem:[%s2323_s1 + $0x38] sm:$0xff]  ;;  %v1516_v11 = vld [vmem:[%s2322_s0] sm:$0xff]  }
  0x12   :  { %1387 = vmatprep.subr.bf16.mxu0 %v74_v3  ;;  %1403 = vmatprep.mubr.bf16.mxu0 %v1516_v11  ;;  %v77_v12 = vpack.c.bf16 %v63_v10, %v62_v8  ;;  %v64_v13 = vld [vmem:[%s2323_s1 + $0x40] sm:$0xff]  ;;  %v65_v14 = vld [vmem:[%s2323_s1 + $0x48] sm:$0xff]  ;;  %v66_v15 = vld [vmem:[%s2323_s1 + $0x50] sm:$0xff] }
  0x13   :  { %1388 = vmatpush3.bf16.msra.mxu0 %v74_v3  ;;  %v78_v16 = vpack.c.bf16 %v65_v14, %v64_v13  ;;  %v67_v17 = vld [vmem:[%s2323_s1 + $0x58] sm:$0xff]  ;;  %v1524_v18 = vld [vmem:[%s2324_s2] sm:$0xff]   ;;  %v1525_v19 = vld [vmem:[%s2324_s2 + $0x8] sm:$0xff]  }
  0x14   :  { %1389 = vmatprep.subr.bf16.mxu0 %v75_v5  ;;  %v68_v20 = vld [vmem:[%s2323_s1 + $0x60] sm:$0xff]  ;;  %1419 = vmatprep.subr.bf16.mxu1 %v1524_v18  ;;  %v79_v21 = vpack.c.bf16 %v67_v17, %v66_v15  ;;  %v69_v22 = vld [vmem:[%s2323_s1 + $0x68] sm:$0xff]  ;;  %v1526_v23 = vld [vmem:[%s2324_s2 + $0x10] sm:$0xff]  }
  0x15   :  { %1420 = vmatpush3.bf16.msra.mxu1 %v1524_v18  ;;  %v70_v24 = vld [vmem:[%s2323_s1 + $0x70] sm:$0xff]  ;;  %v71_v25 = vld [vmem:[%s2323_s1 + $0x78] sm:$0xff]  ;;  %v80_v27 = vpack.c.bf16 %v69_v22, %v68_v20  ;;  %v1528_v29 = vld [vmem:[%s2324_s2 + $0x20] sm:$0xff]  }
  0x16   :  { %1421 = vmatprep.subr.bf16.mxu1 %v1525_v19  ;;  %v1527_v26 = vld [vmem:[%s2324_s2 + $0x18] sm:$0xff]   ;;  %v81_v28 = vpack.c.bf16 %v71_v25, %v70_v24  ;;  %v1529_v30 = vld [vmem:[%s2324_s2 + $0x28] sm:$0xff]   ;;  %v1739_v32 = vld [vmem:[%s2322_s0 + $0x10] sm:$0xff]  }
  0x17   :  { %1390 = vmatpush3.bf16.msra.mxu0 %v75_v5  ;;  %v1734_v31 = vld [vmem:[%s2322_s0 + $0x8] sm:$0xff]   ;;  %v1530_v33 = vld [vmem:[%s2324_s2 + $0x30] sm:$0xff]   ;;  %v1749_v34 = vld [vmem:[%s2322_s0 + $0x18] sm:$0xff]  }
  0x18   :  { %1391 = vmatprep.subr.bf16.mxu0 %v76_v9  ;;  %v1754_v35 = vld [vmem:[%s2322_s0 + $0x20] sm:$0xff]   ;;  %v1761_v36 = vld [vmem:[%s2322_s0 + $0x28] sm:$0xff]   ;;  %v1766_v37 = vld [vmem:[%s2322_s0 + $0x30] sm:$0xff]  }
  0x19   :  { %1422 = vmatpush3.bf16.msra.mxu1 %v1525_v19  ;;  %v1773_v38 = vld [vmem:[%s2322_s0 + $0x38] sm:$0xff]   ;;  %v1284_v0 = vld [vmem:[%s2325_s3] ss:$0 sm:$0xff] }
  0x1a   :  { %1423 = vmatprep.subr.bf16.mxu1 %v1526_v23  ;;  %v1531_v39 = vld [vmem:[%s2324_s2 + $0x38] sm:$0xff]  }
  0x1b   :  { %1392 = vmatpush3.bf16.msra.mxu0 %v76_v9 }
  0x1c   :  { %1393 = vmatprep.subr.bf16.mxu0 %v77_v12 }
  0x1d   :  { %1424 = vmatpush3.bf16.msra.mxu1 %v1526_v23 }
  0x1e   :  { %1425 = vmatprep.subr.bf16.mxu1 %v1527_v26 }
  0x1f   :  { %1394 = vmatpush3.bf16.msra.mxu0 %v77_v12 }
  0x20   :  { %1395 = vmatprep.subr.bf16.mxu0 %v78_v16 }
  0x21   :  { %1426 = vmatpush3.bf16.msra.mxu1 %v1527_v26 }
  0x22   :  { %1427 = vmatprep.subr.bf16.mxu1 %v1528_v29 }
  0x23   :  { %1396 = vmatpush3.bf16.msra.mxu0 %v78_v16 }
  0x24   :  { %1397 = vmatprep.subr.bf16.mxu0 %v79_v21 }
  0x25   :  { %1428 = vmatpush3.bf16.msra.mxu1 %v1528_v29 }
  0x26   :  { %1429 = vmatprep.subr.bf16.mxu1 %v1529_v30 }
  0x27   :  { %1398 = vmatpush3.bf16.msra.mxu0 %v79_v21 }
  0x28   :  { %1399 = vmatprep.subr.bf16.mxu0 %v80_v27 }
  0x29   :  { %1430 = vmatpush3.bf16.msra.mxu1 %v1529_v30 }
  0x2a   :  { %1431 = vmatprep.subr.bf16.mxu1 %v1530_v33 }
  0x2b   :  { %1400 = vmatpush3.bf16.msra.mxu0 %v80_v27 }
  0x2c   :  { %1401 = vmatprep.subr.bf16.mxu0 %v81_v28 }
  0x2d   :  { %1432 = vmatpush3.bf16.msra.mxu1 %v1530_v33 }
  0x2e   :  { %1433 = vmatprep.subr.bf16.mxu1 %v1531_v39 }
  0x2f   :  { %1402 = vmatpush3.bf16.msra.mxu0 %v81_v28 }
  0x31   :  { %1434 = vmatpush3.bf16.msra.mxu1 %v1531_v39 }
  0x32   :  { %1404 = vmatmul.mubr.bf16.vlgmr.msra.gmra.mrb[0].mxu0 %v1734_v31 }
  0x33   :  { %1407 = vmatprep.mubr.bf16.mxu0 %v1739_v32 }
  0x3a   :  { %1408 = vmatmul.mubr.bf16.gmra.mrb[4].mxu0 %v1749_v34 }
  0x3b   :  { %1411 = vmatprep.mubr.bf16.mxu0 %v1754_v35 }
  0x42   :  { %1412 = vmatmul.mubr.bf16.gmra.mrb[8].mxu0 %v1761_v36 }
  0x43   :  { %1415 = vmatprep.mubr.bf16.mxu0 %v1766_v37 }
  0x4a   :  { %1416 = vmatmul.mubr.bf16.gmra.mrb[12].mxu0 %v1773_v38 }
  0x4b   :  { %1467 = vmatprep.mubr.bf16.mxu0 %v1516_v11 }
 0x105   :  { %v1405_v40 = vpop.f32.mrb[0].mxu0 }
 0x106   :  { %v164_v41 = vpop.f32.mrb[1].mxu0 }
 0x107   :  { %v1406_v42 = vpop.f32.mrb[2].mxu0 }
 0x108   :  { %v228_v43 = vpack.c.bf16 %v1406_v42, %v1405_v40  ;;  %v167_v44 = vpop.f32.mrb[3].mxu0  ;;  %v72_v40 = vlaneseq }
 0x109   :  { %v227_v45 = vpack.c.bf16 %v167_v44, %v164_v41 }
 0x10a   :  { %v1824_v41 = vand.u32 127, %v72_v40 }
 0x10b   :  { %1435 = vmatprep.mubr.bf16.mxu1 %v227_v45 }
 0x10c   :  { %1436 = vmatmul.mubr.bf16.vlgmr.msra.gmra.mrb[0].mxu1 %v228_v43  ;;  %vm449_vm0 = vcmp.lt.s32.totalorder %v1824_v41, 32 }
 0x10d   :  { %v1409_v46 = vpop.f32.mrb[4].mxu0 }
 0x10e   :  { %v180_v47 = vpop.f32.mrb[5].mxu0 }
 0x10f   :  { %v1410_v48 = vpop.f32.mrb[6].mxu0 }
 0x110   :  { %v230_v49 = vpack.c.bf16 %v1410_v48, %v1409_v46  ;;  %v183_v50 = vpop.f32.mrb[7].mxu0 }
 0x111   :  { %v229_v51 = vpack.c.bf16 %v183_v50, %v180_v47 }
 0x113   :  { %1439 = vmatprep.mubr.bf16.mxu1 %v229_v51 }
 0x114   :  { %1440 = vmatmul.mubr.bf16.gmra.mrb[4].mxu1 %v230_v49 }
 0x115   :  { %v1413_v52 = vpop.f32.mrb[8].mxu0 }
 0x116   :  { %v196_v53 = vpop.f32.mrb[9].mxu0 }
 0x117   :  { %v1414_v54 = vpop.f32.mrb[10].mxu0 }
 0x118   :  { %v232_v55 = vpack.c.bf16 %v1414_v54, %v1413_v52  ;;  %v199_v56 = vpop.f32.mrb[11].mxu0 }
 0x119   :  { %v231_v57 = vpack.c.bf16 %v199_v56, %v196_v53 }
 0x11b   :  { %1443 = vmatprep.mubr.bf16.mxu1 %v231_v57 }
 0x11c   :  { %1444 = vmatmul.mubr.bf16.gmra.mrb[8].mxu1 %v232_v55 }
 0x11d   :  { %v1417_v58 = vpop.f32.mrb[12].mxu0 }
 0x11e   :  { %v212_v59 = vpop.f32.mrb[13].mxu0 }
 0x11f   :  { %v1418_v60 = vpop.f32.mrb[14].mxu0 }
 0x120   :  { %v234_v61 = vpack.c.bf16 %v1418_v60, %v1417_v58  ;;  %v215_v62 = vpop.f32.mrb[15].mxu0 }
 0x121   :  { %v233_v63 = vpack.c.bf16 %v215_v62, %v212_v59 }
 0x123   :  { %1447 = vmatprep.mubr.bf16.mxu1 %v233_v63 }
 0x124   :  { %1448 = vmatmul.mubr.bf16.gmra.mrb[12].mxu1 %v234_v61 }
 0x1df   :  { %v1437_v1 = vpop.f32.mrb[0].mxu1 }
 0x1e0   :  { %v1782_v2 = vadd.f32 %v1437_v1, %v1284_v0  ;;  %v338_v3 = vpop.f32.mrb[1].mxu1 }
 0x1e1   :  { %v339_v4 = vadd.f32 %v1284_v0, %v338_v3  ;;  %v1438_v5 = vpop.f32.mrb[2].mxu1 }
 0x1e2   :  { %405 = vadd.xlane.f32.xlu1 %v1782_v2  ;;  %v341_v6 = vpop.f32.mrb[3].mxu1  ;;  %v1785_v7 = vadd.f32 %v1438_v5, %v1284_v0 }
 0x1e3   :  { %401 = vadd.xlane.f32.xlu0 %v339_v4  ;;  %v342_v8 = vadd.f32 %v1284_v0, %v341_v6 }
 0x1e6   :  { %407 = vadd.xlane.f32.xlu1 %v1785_v7 }
 0x1e7   :  { %403 = vadd.xlane.f32.xlu0 %v342_v8  ;;  %v1441_v9 = vpop.f32.mrb[4].mxu1 }
 0x1e8   :  { %v354_v10 = vpop.f32.mrb[5].mxu1  ;;  %v1793_v15 = vadd.f32 %v1441_v9, %v1284_v0 }
 0x1e9   :  { %v1788_v11 = vadd.f32 %v1284_v0, %v354_v10  ;;  %v1442_v12 = vpop.f32.mrb[6].mxu1 }
 0x1ea   :  { %v357_v13 = vpop.f32.mrb[7].mxu1  ;;  %v1796_v16 = vadd.f32 %v1442_v12, %v1284_v0 }
 0x1eb   :  { %v1790_v14 = vadd.f32 %v1284_v0, %v357_v13  ;;  %409 = vadd.xlane.f32.xlu0 %v1788_v11 }
 0x1ed   :  { %411 = vadd.xlane.f32.xlu1 %v1790_v14 }
 0x1ef   :  { %413 = vadd.xlane.f32.xlu0 %v1793_v15  ;;  %v1445_v17 = vpop.f32.mrb[8].mxu1 }
 0x1f0   :  { %v370_v18 = vpop.f32.mrb[9].mxu1  ;;  %v1805_v23 = vadd.f32 %v1445_v17, %v1284_v0 }
 0x1f1   :  { %v1799_v19 = vadd.f32 %v1284_v0, %v370_v18  ;;  %415 = vadd.xlane.f32.xlu1 %v1796_v16  ;;  %v1446_v20 = vpop.f32.mrb[10].mxu1 }
 0x1f2   :  { %v373_v21 = vpop.f32.mrb[11].mxu1  ;;  %v1808_v24 = vadd.f32 %v1446_v20, %v1284_v0 }
 0x1f3   :  { %v1802_v22 = vadd.f32 %v1284_v0, %v373_v21  ;;  %417 = vadd.xlane.f32.xlu0 %v1799_v19 }
 0x1f5   :  { %419 = vadd.xlane.f32.xlu1 %v1802_v22 }
 0x1f7   :  { %421 = vadd.xlane.f32.xlu0 %v1805_v23  ;;  %v1449_v25 = vpop.f32.mrb[12].mxu1 }
 0x1f8   :  { %v386_v26 = vpop.f32.mrb[13].mxu1  ;;  %v1817_v33 = vadd.f32 %v1449_v25, %v1284_v0 }
 0x1f9   :  { %v1811_v27 = vadd.f32 %v1284_v0, %v386_v26  ;;  %423 = vadd.xlane.f32.xlu1 %v1808_v24  ;;  %v1450_v28 = vpop.f32.mrb[14].mxu1 }
 0x1fa   :  { %v389_v29 = vpop.f32.mrb[15].mxu1  ;;  %v1820_v39 = vadd.f32 %v1450_v28, %v1284_v0 }
 0x1fb   :  { %v1814_v30 = vadd.f32 %v1284_v0, %v389_v29  ;;  %425 = vadd.xlane.f32.xlu0 %v1811_v27 }
 0x1fd   :  { %427 = vadd.xlane.f32.xlu1 %v1814_v30 }
 0x1ff   :  { %429 = vadd.xlane.f32.xlu0 %v1817_v33 }
 0x201   :  { %431 = vadd.xlane.f32.xlu1 %v1820_v39 }
 0x26f   :  { %v406_v42 = vpop.xlane.xlu1 %405 }
 0x270   :  { %v435_v43 = vmul.f32 0.03125, %v406_v42  ;;  %v402_v44 = vpop.xlane.xlu0 %401 }
 0x271   :  { %v433_v45 = vmul.f32 0.03125, %v402_v44 }
 0x272   :  { %v452_v46 = vsub.f32 %v1782_v2, %v435_v43 }
 0x273   :  { %v450_v47 = vsub.f32 %v339_v4, %v433_v45  ;;  %v408_v48 = vpop.xlane.xlu1 %407 }
 0x274   :  { %v436_v49 = vmul.f32 0.03125, %v408_v48  ;;  %v404_v50 = vpop.xlane.xlu0 %403  ;;  %v1837_v56 = vsel %vm449_vm0, %v452_v46, 0.0 }
 0x275   :  { %v434_v51 = vmul.f32 0.03125, %v404_v50  ;;  %v1830_v52 = vsel %vm449_vm0, %v450_v47, 0.0  ;;  %v486_v62 = vmul.f32 %v1837_v56, %v1837_v56 }
 0x276   :  { %v484_v53 = vmul.f32 %v1830_v52, %v1830_v52  ;;  %v453_v54 = vsub.f32 %v1785_v7, %v436_v49 }
 0x277   :  { %v451_v55 = vsub.f32 %v342_v8, %v434_v51 }
 0x278   :  { %v410_v57 = vpop.xlane.xlu0 %409  ;;  %500 = vadd.xlane.f32.xlu0 %v484_v53  ;;  %v1850_v1 = vsel %vm449_vm0, %v453_v54, 0.0 }
 0x279   :  { %v437_v58 = vmul.f32 0.03125, %v410_v57  ;;  %v1841_v59 = vsel %vm449_vm0, %v451_v55, 0.0  ;;  %v487_v7 = vmul.f32 %v1850_v1, %v1850_v1 }
 0x27a   :  { %v412_v60 = vpop.xlane.xlu1 %411  ;;  %v485_v61 = vmul.f32 %v1841_v59, %v1841_v59 }
 0x27b   :  { %v454_v63 = vsub.f32 %v1788_v11, %v437_v58  ;;  %v438_v0 = vmul.f32 0.03125, %v412_v60 }
 0x27c   :  { %v414_v2 = vpop.xlane.xlu0 %413  ;;  %502 = vadd.xlane.f32.xlu1 %v485_v61  ;;  %504 = vadd.xlane.f32.xlu0 %v486_v62 }
 0x27d   :  { %v455_v3 = vsub.f32 %v1790_v14, %v438_v0  ;;  %v439_v4 = vmul.f32 0.03125, %v414_v2  ;;  %v1855_v5 = vsel %vm449_vm0, %v454_v63, 0.0 }
 0x27e   :  { %v416_v6 = vpop.xlane.xlu1 %415  ;;  %v488_v8 = vmul.f32 %v1855_v5, %v1855_v5 }
 0x27f   :  { %v456_v9 = vsub.f32 %v1793_v15, %v439_v4  ;;  %v440_v10 = vmul.f32 0.03125, %v416_v6  ;;  %v1864_v11 = vsel %vm449_vm0, %v455_v3, 0.0 }
 0x280   :  { %v418_v12 = vpop.xlane.xlu0 %417  ;;  %506 = vadd.xlane.f32.xlu1 %v487_v7  ;;  %508 = vadd.xlane.f32.xlu0 %v488_v8  ;;  %v489_v20 = vmul.f32 %v1864_v11, %v1864_v11  ;;  %v1533_v8 = vld [vmem:[%s2324_s2 + $0x48] sm:$0xff]  }
 0x281   :  { %v457_v13 = vsub.f32 %v1796_v16, %v440_v10  ;;  %v441_v14 = vmul.f32 0.03125, %v418_v12  ;;  %v1869_v17 = vsel %vm449_vm0, %v456_v9, 0.0  ;;  %v1534_v9 = vld [vmem:[%s2324_s2 + $0x50] sm:$0xff]   ;;  %v1535_v10 = vld [vmem:[%s2324_s2 + $0x58] sm:$0xff]   ;;  %v1536_v12 = vld [vmem:[%s2324_s2 + $0x60] sm:$0xff]  }
 0x282   :  { %v420_v18 = vpop.xlane.xlu1 %419  ;;  %v490_v15 = vmul.f32 %v1869_v17, %v1869_v17 }
 0x283   :  { %v458_v21 = vsub.f32 %v1799_v19, %v441_v14  ;;  %v442_v25 = vmul.f32 0.03125, %v420_v18  ;;  %v1878_v26 = vsel %vm449_vm0, %v457_v13, 0.0  ;;  %v1537_v13 = vld [vmem:[%s2324_s2 + $0x68] sm:$0xff]   ;;  %v1538_v14 = vld [vmem:[%s2324_s2 + $0x70] sm:$0xff]  }
 0x284   :  { %v422_v16 = vpop.xlane.xlu0 %421  ;;  %510 = vadd.xlane.f32.xlu1 %v489_v20  ;;  %512 = vadd.xlane.f32.xlu0 %v490_v15  ;;  %v491_v43 = vmul.f32 %v1878_v26, %v1878_v26 }
 0x285   :  { %v459_v28 = vsub.f32 %v1802_v22, %v442_v25  ;;  %v443_v29 = vmul.f32 0.03125, %v422_v16  ;;  %v1883_v40 = vsel %vm449_vm0, %v458_v21, 0.0 }
 0x286   :  { %v424_v42 = vpop.xlane.xlu1 %423  ;;  %v492_v19 = vmul.f32 %v1883_v40, %v1883_v40 }
 0x287   :  { %v460_v44 = vsub.f32 %v1805_v23, %v443_v29  ;;  %v444_v45 = vmul.f32 0.03125, %v424_v42  ;;  %v1892_v46 = vsel %vm449_vm0, %v459_v28, 0.0 }
 0x288   :  { %514 = vadd.xlane.f32.xlu1 %v491_v43  ;;  %516 = vadd.xlane.f32.xlu0 %v492_v19  ;;  %v426_v22 = vpop.xlane.xlu0 %425  ;;  %v493_v51 = vmul.f32 %v1892_v46, %v1892_v46 }
 0x289   :  { %v461_v47 = vsub.f32 %v1808_v24, %v444_v45  ;;  %v445_v48 = vmul.f32 0.03125, %v426_v22  ;;  %v1897_v49 = vsel %vm449_vm0, %v460_v44, 0.0 }
 0x28a   :  { %v428_v50 = vpop.xlane.xlu1 %427  ;;  %v494_v23 = vmul.f32 %v1897_v49, %v1897_v49 }
 0x28b   :  { %v462_v53 = vsub.f32 %v1811_v27, %v445_v48  ;;  %v446_v54 = vmul.f32 0.03125, %v428_v50  ;;  %v1906_v55 = vsel %vm449_vm0, %v461_v47, 0.0 }
 0x28c   :  { %518 = vadd.xlane.f32.xlu1 %v493_v51  ;;  %520 = vadd.xlane.f32.xlu0 %v494_v23  ;;  %v430_v24 = vpop.xlane.xlu0 %429  ;;  %v495_v62 = vmul.f32 %v1906_v55, %v1906_v55 }
 0x28d   :  { %v463_v57 = vsub.f32 %v1814_v30, %v446_v54  ;;  %v447_v58 = vmul.f32 0.03125, %v430_v24  ;;  %v1911_v60 = vsel %vm449_vm0, %v462_v53, 0.0 }
 0x28e   :  { %v432_v61 = vpop.xlane.xlu1 %431  ;;  %v496_v27 = vmul.f32 %v1911_v60, %v1911_v60 }
 0x28f   :  { %v464_v63 = vsub.f32 %v1817_v33, %v447_v58  ;;  %v448_v0 = vmul.f32 0.03125, %v432_v61  ;;  %v1920_v2 = vsel %vm449_vm0, %v463_v57, 0.0  ;;  %v1961_v57 = vld [vmem:[%s2326_s4] ss:$0 sm:$0xff] }
 0x290   :  { %522 = vadd.xlane.f32.xlu1 %v495_v62  ;;  %524 = vadd.xlane.f32.xlu0 %v496_v27  ;;  %v497_v4 = vmul.f32 %v1920_v2, %v1920_v2 }
 0x291   :  { %v465_v30 = vsub.f32 %v1820_v39, %v448_v0  ;;  %v1925_v3 = vsel %vm449_vm0, %v464_v63, 0.0  ;;  %v1532_v39 = vld [vmem:[%s2324_s2 + $0x40] sm:$0xff]  }
 0x292   :  { %v498_v6 = vmul.f32 %v1925_v3, %v1925_v3  ;;  %1483 = vmatprep.subr.bf16.mxu1 %v1532_v39  ;;  %v1967_v0 = vld [vmem:[%s2327_s5] ss:$0 sm:$0xff] }
 0x293   :  { %v1933_v33 = vsel %vm449_vm0, %v465_v30, 0.0  ;;  %1484 = vmatpush3.bf16.msra.mxu1 %v1532_v39 }
 0x294   :  { %526 = vadd.xlane.f32.xlu1 %v497_v4  ;;  %528 = vadd.xlane.f32.xlu0 %v498_v6  ;;  %v499_v7 = vmul.f32 %v1933_v33, %v1933_v33 }
 0x295   :  { %1485 = vmatprep.subr.bf16.mxu1 %v1533_v8 }
 0x297   :  { %1486 = vmatpush3.bf16.msra.mxu1 %v1533_v8 }
 0x298   :  { %530 = vadd.xlane.f32.xlu1 %v499_v7  ;;  %1487 = vmatprep.subr.bf16.mxu1 %v1534_v9 }
 0x29b   :  { %1488 = vmatpush3.bf16.msra.mxu1 %v1534_v9 }
 0x29c   :  { %1489 = vmatprep.subr.bf16.mxu1 %v1535_v10 }
 0x29f   :  { %1490 = vmatpush3.bf16.msra.mxu1 %v1535_v10 }
 0x2a0   :  { %1491 = vmatprep.subr.bf16.mxu1 %v1536_v12 }
 0x2a3   :  { %1492 = vmatpush3.bf16.msra.mxu1 %v1536_v12  ;;  %v1972_v12 = vstv %s638_s10 }
 0x2a4   :  { %1493 = vmatprep.subr.bf16.mxu1 %v1537_v13 }
 0x2a7   :  { %1494 = vmatpush3.bf16.msra.mxu1 %v1537_v13 }
 0x2a8   :  { %1495 = vmatprep.subr.bf16.mxu1 %v1538_v14 }
 0x2ab   :  { %1496 = vmatpush3.bf16.msra.mxu1 %v1538_v14 }
 0x305   :  { %v501_v18 = vpop.xlane.xlu0 %500 }
 0x306   :  { %v532_v20 = vmul.f32 0.03125, %v501_v18 }
 0x308   :  { %v548_v15 = vadd.f32 1e-05, %v532_v20 }
 0x309   :  { %v503_v21 = vpop.xlane.xlu1 %502  ;;  %v505_v25 = vpop.xlane.xlu0 %504 }
 0x30a   :  { %1540 = vrsqrt.f32 %v548_v15  ;;  %v533_v16 = vmul.f32 0.03125, %v503_v21  ;;  %v534_v28 = vmul.f32 0.03125, %v505_v25 }
 0x30c   :  { %v549_v29 = vadd.f32 1e-05, %v533_v16  ;;  %v550_v42 = vadd.f32 1e-05, %v534_v28 }
 0x30d   :  { %v507_v43 = vpop.xlane.xlu1 %506  ;;  %v509_v19 = vpop.xlane.xlu0 %508 }
 0x30e   :  { %1542 = vrsqrt.f32 %v549_v29  ;;  %v535_v44 = vmul.f32 0.03125, %v507_v43  ;;  %v536_v45 = vmul.f32 0.03125, %v509_v19 }
 0x30f   :  { %1544 = vrsqrt.f32 %v550_v42 }
 0x310   :  { %v551_v22 = vadd.f32 1e-05, %v535_v44  ;;  %v552_v47 = vadd.f32 1e-05, %v536_v45 }
 0x311   :  { %v511_v48 = vpop.xlane.xlu1 %510  ;;  %v513_v50 = vpop.xlane.xlu0 %512 }
 0x312   :  { %1546 = vrsqrt.f32 %v551_v22  ;;  %v537_v51 = vmul.f32 0.03125, %v511_v48  ;;  %v538_v23 = vmul.f32 0.03125, %v513_v50 }
 0x313   :  { %1548 = vrsqrt.f32 %v552_v47 }
 0x314   :  { %v1541_v53 = vpop.eup %1540  ;;  %v553_v54 = vadd.f32 1e-05, %v537_v51  ;;  %v554_v24 = vadd.f32 1e-05, %v538_v23 }
 0x315   :  { %v580_v58 = vmul.f32 %v1541_v53, %v1830_v52  ;;  %v515_v61 = vpop.xlane.xlu1 %514  ;;  %v517_v62 = vpop.xlane.xlu0 %516 }
 0x316   :  { %1550 = vrsqrt.f32 %v553_v54  ;;  %v539_v27 = vmul.f32 0.03125, %v515_v61  ;;  %v540_v63 = vmul.f32 0.03125, %v517_v62 }
 0x317   :  { %1552 = vrsqrt.f32 %v554_v24  ;;  %v601_v30 = vmul.f32 %v1961_v57, %v580_v58 }
 0x318   :  { %v1543_v4 = vpop.eup %1542  ;;  %v555_v6 = vadd.f32 1e-05, %v539_v27  ;;  %v556_v7 = vadd.f32 1e-05, %v540_v63 }
 0x319   :  { %v1545_v39 = vpop.eup %1544  ;;  %v581_v8 = vmul.f32 %v1543_v4, %v1841_v59  ;;  %v519_v52 = vpop.xlane.xlu1 %518  ;;  %v622_v10 = vadd.f32 %v1967_v0, %v601_v30 }
 0x31a   :  { %v521_v9 = vpop.xlane.xlu0 %520  ;;  %v582_v13 = vmul.f32 %v1545_v39, %v1837_v56  ;;  %1554 = vrsqrt.f32 %v555_v6  ;;  %v541_v14 = vmul.f32 0.03125, %v519_v52 }
 0x31b   :  { %v542_v18 = vmul.f32 0.03125, %v521_v9  ;;  %1556 = vrsqrt.f32 %v556_v7  ;;  %v602_v20 = vmul.f32 %v1961_v57, %v581_v8  ;;  %v656_v16 = vmul.f32 %v1972_v12, %v622_v10 }
 0x31c   :  { %v1547_v15 = vpop.eup %1546  ;;  %v557_v21 = vadd.f32 1e-05, %v541_v14  ;;  %v603_v59 = vmul.f32 %v1961_v57, %v582_v13  ;;  %vm639_vm1 = vcmp.ge.f32.partialorder %v622_v10, 0.0 }
 0x31d   :  { %v558_v25 = vadd.f32 1e-05, %v542_v18  ;;  %v1549_v28 = vpop.eup %1548  ;;  %v583_v29 = vmul.f32 %v1547_v15, %v1850_v1  ;;  %v523_v42 = vpop.xlane.xlu1 %522  ;;  %v623_v56 = vadd.f32 %v1967_v0, %v602_v20  ;;  %v672_v1 = vsel %vm639_vm1, %v622_v10, %v656_v16 }
 0x31e   :  { %v525_v43 = vpop.xlane.xlu0 %524  ;;  %v584_v19 = vmul.f32 %v1549_v28, %v1855_v5  ;;  %1558 = vrsqrt.f32 %v557_v21  ;;  %v543_v44 = vmul.f32 0.03125, %v523_v42  ;;  %v624_v23 = vadd.f32 %v1967_v0, %v603_v59 }
 0x31f   :  { %v544_v45 = vmul.f32 0.03125, %v525_v43  ;;  %1560 = vrsqrt.f32 %v558_v25  ;;  %vm640_vm2 = vcmp.ge.f32.partialorder %v623_v56, 0.0  ;;  %v657_v22 = vmul.f32 %v1972_v12, %v623_v56 }
 0x320   :  { %v604_v47 = vmul.f32 %v1961_v57, %v583_v29  ;;  %v1551_v48 = vpop.eup %1550  ;;  %v559_v50 = vadd.f32 1e-05, %v543_v44  ;;  %v605_v62 = vmul.f32 %v1961_v57, %v584_v19  ;;  %vm641_vm3 = vcmp.ge.f32.partialorder %v624_v23, 0.0 }
 0x321   :  { %v560_v51 = vadd.f32 1e-05, %v544_v45  ;;  %v1553_v53 = vpop.eup %1552  ;;  %v585_v54 = vmul.f32 %v1551_v48, %v1864_v11  ;;  %v527_v24 = vpop.xlane.xlu1 %526  ;;  %v673_v58 = vsel %vm640_vm2, %v623_v56, %v657_v22  ;;  %v658_v11 = vmul.f32 %v1972_v12, %v624_v23 }
 0x322   :  { %v529_v5 = vpop.xlane.xlu0 %528  ;;  %v625_v61 = vadd.f32 %v1967_v0, %v604_v47  ;;  %v586_v27 = vmul.f32 %v1553_v53, %v1869_v17  ;;  %1562 = vrsqrt.f32 %v559_v50  ;;  %v545_v63 = vmul.f32 0.03125, %v527_v24 }
 0x323   :  { %v546_v30 = vmul.f32 0.03125, %v529_v5  ;;  %1564 = vrsqrt.f32 %v560_v51  ;;  %v688_v4 = vpack.c.bf16 %v673_v58, %v672_v1  ;;  %v606_v17 = vmul.f32 %v1961_v57, %v585_v54 }
 0x324   :  { %vm642_vm4 = vcmp.ge.f32.partialorder %v625_v61, 0.0  ;;  %v1555_v6 = vpop.eup %1554  ;;  %v561_v7 = vadd.f32 1e-05, %v545_v63  ;;  %v659_v8 = vmul.f32 %v1972_v12, %v625_v61  ;;  %v626_v13 = vadd.f32 %v1967_v0, %v605_v62 }
 0x325   :  { %v562_v39 = vadd.f32 1e-05, %v546_v30  ;;  %v1557_v52 = vpop.eup %1556  ;;  %v587_v9 = vmul.f32 %v1555_v6, %v1878_v26  ;;  %1451 = vmatprep.subr.bf16.mxu0 %v688_v4  ;;  %v531_v10 = vpop.xlane.xlu1 %530  ;;  %v607_v14 = vmul.f32 %v1961_v57, %v586_v27  ;;  %v674_v15 = vsel %vm641_vm3, %v624_v23, %v658_v11 }
 0x326   :  { %v588_v18 = vmul.f32 %v1557_v52, %v1883_v40  ;;  %1566 = vrsqrt.f32 %v561_v7  ;;  %v547_v20 = vmul.f32 0.03125, %v531_v10  ;;  %1452 = vmatpush3.bf16.msra.mxu0 %v688_v4  ;;  %v675_v21 = vsel %vm642_vm4, %v625_v61, %v659_v8 }
 0x327   :  { %1568 = vrsqrt.f32 %v562_v39  ;;  %v627_v26 = vadd.f32 %v1967_v0, %v606_v17  ;;  %vm643_vm5 = vcmp.ge.f32.partialorder %v626_v13, 0.0  ;;  %v689_v59 = vpack.c.bf16 %v675_v21, %v674_v15 }
 0x328   :  { %v1559_v25 = vpop.eup %1558  ;;  %v563_v16 = vadd.f32 1e-05, %v547_v20  ;;  %v660_v28 = vmul.f32 %v1972_v12, %v626_v13  ;;  %v608_v29 = vmul.f32 %v1961_v57, %v587_v9  ;;  %v628_v56 = vadd.f32 %v1967_v0, %v607_v14 }
 0x329   :  { %v1561_v42 = vpop.eup %1560  ;;  %v589_v40 = vmul.f32 %v1559_v25, %v1892_v46  ;;  %vm644_vm6 = vcmp.ge.f32.partialorder %v627_v26, 0.0  ;;  %v661_v43 = vmul.f32 %v1972_v12, %v627_v26  ;;  %1453 = vmatprep.subr.bf16.mxu0 %v689_v59  ;;  %v609_v48 = vmul.f32 %v1961_v57, %v588_v18 }
 0x32a   :  { %v590_v19 = vmul.f32 %v1561_v42, %v1897_v49  ;;  %1570 = vrsqrt.f32 %v563_v16  ;;  %v676_v44 = vsel %vm643_vm5, %v626_v13, %v660_v28  ;;  %v629_v45 = vadd.f32 %v1967_v0, %v608_v29  ;;  %1454 = vmatpush3.bf16.msra.mxu0 %v689_v59 }
 0x32b   :  { %v677_v22 = vsel %vm644_vm6, %v627_v26, %v661_v43  ;;  %vm645_vm7 = vcmp.ge.f32.partialorder %v628_v56, 0.0  ;;  %v662_v47 = vmul.f32 %v1972_v12, %v628_v56  ;;  %v610_v1 = vmul.f32 %v1961_v57, %v589_v40 }
 0x32c   :  { %v1563_v46 = vpop.eup %1562  ;;  %v690_v50 = vpack.c.bf16 %v677_v22, %v676_v44  ;;  %vm646_vm8 = vcmp.ge.f32.partialorder %v629_v45, 0.0  ;;  %v663_v51 = vmul.f32 %v1972_v12, %v629_v45  ;;  %v630_v53 = vadd.f32 %v1967_v0, %v609_v48 }
 0x32d   :  { %v1565_v49 = vpop.eup %1564  ;;  %v591_v23 = vmul.f32 %v1563_v46, %v1906_v55  ;;  %v611_v54 = vmul.f32 %v1961_v57, %v590_v19  ;;  %v678_v5 = vsel %vm645_vm7, %v628_v56, %v662_v47  ;;  %v631_v61 = vadd.f32 %v1967_v0, %v610_v1 }
 0x32e   :  { %v592_v24 = vmul.f32 %v1565_v49, %v1911_v60  ;;  %1455 = vmatprep.subr.bf16.mxu0 %v690_v50  ;;  %v679_v58 = vsel %vm646_vm8, %v629_v45, %v663_v51  ;;  %vm647_vm9 = vcmp.ge.f32.partialorder %v630_v53, 0.0  ;;  %v664_v27 = vmul.f32 %v1972_v12, %v630_v53 }
 0x32f   :  { %1456 = vmatpush3.bf16.msra.mxu0 %v690_v50  ;;  %v691_v62 = vpack.c.bf16 %v679_v58, %v678_v5  ;;  %v612_v63 = vmul.f32 %v1961_v57, %v591_v23  ;;  %vm648_vm10 = vcmp.ge.f32.partialorder %v631_v61, 0.0  ;;  %v665_v55 = vmul.f32 %v1972_v12, %v631_v61 }
 0x330   :  { %v1567_v30 = vpop.eup %1566  ;;  %v632_v4 = vadd.f32 %v1967_v0, %v611_v54  ;;  %v613_v60 = vmul.f32 %v1961_v57, %v592_v24  ;;  %v680_v39 = vsel %vm647_vm9, %v630_v53, %v664_v27  ;;  %vm1016_vm1 = vcmp.lt.s32.totalorder %v1824_v41, 16 }
 0x331   :  { %v1569_v6 = vpop.eup %1568  ;;  %v593_v7 = vmul.f32 %v1567_v30, %v1920_v2  ;;  %1457 = vmatprep.subr.bf16.mxu0 %v691_v62  ;;  %v633_v11 = vadd.f32 %v1967_v0, %v612_v63  ;;  %v681_v52 = vsel %vm648_vm10, %v631_v61, %v665_v55 }
 0x332   :  { %v594_v8 = vmul.f32 %v1569_v6, %v1925_v3  ;;  %vm649_vm11 = vcmp.ge.f32.partialorder %v632_v4, 0.0  ;;  %v666_v9 = vmul.f32 %v1972_v12, %v632_v4  ;;  %v692_v10 = vpack.c.bf16 %v681_v52, %v680_v39 }
 0x333   :  { %1458 = vmatpush3.bf16.msra.mxu0 %v691_v62  ;;  %vm650_vm12 = vcmp.ge.f32.partialorder %v633_v11, 0.0  ;;  %v667_v17 = vmul.f32 %v1972_v12, %v633_v11  ;;  %v614_v13 = vmul.f32 %v1961_v57, %v593_v7  ;;  %v634_v2 = vadd.f32 %v1967_v0, %v613_v60  ;;  %v1311_v62 = vld [vmem:[%s2325_s3 + $0x1] ss:$0 sm:$0xff]  ;;  %s1322_s3 = sld [smem:[#allocation2 + $0x1]] }
 0x334   :  { %v1571_v14 = vpop.eup %1570  ;;  %v615_v18 = vmul.f32 %v1961_v57, %v594_v8  ;;  %1459 = vmatprep.subr.bf16.mxu0 %v692_v10  ;;  %v682_v3 = vsel %vm649_vm11, %v632_v4, %v666_v9 }
 0x335   :  { %v595_v20 = vmul.f32 %v1571_v14, %v1933_v33  ;;  %v683_v15 = vsel %vm650_vm12, %v633_v11, %v667_v17  ;;  %v635_v21 = vadd.f32 %v1967_v0, %v614_v13  ;;  %vm651_vm13 = vcmp.ge.f32.partialorder %v634_v2, 0.0 }
 0x336   :  { %v693_v26 = vpack.c.bf16 %v683_v15, %v682_v3  ;;  %v668_v25 = vmul.f32 %v1972_v12, %v634_v2  ;;  %v636_v16 = vadd.f32 %v1967_v0, %v615_v18 }
 0x337   :  { %1460 = vmatpush3.bf16.msra.mxu0 %v692_v10  ;;  %vm652_vm14 = vcmp.ge.f32.partialorder %v635_v21, 0.0  ;;  %v669_v59 = vmul.f32 %v1972_v12, %v635_v21  ;;  %v616_v28 = vmul.f32 %v1961_v57, %v595_v20  ;;  %v1539_v57 = vld [vmem:[%s2324_s2 + $0x78] sm:$0xff]  }
 0x338   :  { %1461 = vmatprep.subr.bf16.mxu0 %v693_v26  ;;  %v684_v29 = vsel %vm651_vm13, %v634_v2, %v668_v25  ;;  %v670_v40 = vmul.f32 %v1972_v12, %v636_v16  ;;  %vm653_vm15 = vcmp.ge.f32.partialorder %v636_v16, 0.0  ;;  %1497 = vmatprep.subr.bf16.mxu1 %v1539_v57 }
 0x339   :  { %v685_v33 = vsel %vm652_vm14, %v635_v21, %v669_v59  ;;  %v637_v42 = vadd.f32 %v1967_v0, %v616_v28  ;;  %1498 = vmatpush3.bf16.msra.mxu1 %v1539_v57 }
 0x33a   :  { %v694_v43 = vpack.c.bf16 %v685_v33, %v684_v29  ;;  %v686_v19 = vsel %vm653_vm15, %v636_v16, %v670_v40 }
 0x33b   :  { %1462 = vmatpush3.bf16.msra.mxu0 %v693_v26  ;;  %vm654_vm0 = vcmp.ge.f32.partialorder %v637_v42, 0.0  ;;  %v671_v56 = vmul.f32 %v1972_v12, %v637_v42 }
 0x33c   :  { %1463 = vmatprep.subr.bf16.mxu0 %v694_v43 }
 0x33d   :  { %v687_v44 = vsel %vm654_vm0, %v637_v42, %v671_v56 }
 0x33e   :  { %v695_v45 = vpack.c.bf16 %v687_v44, %v686_v19 }
 0x33f   :  { %1464 = vmatpush3.bf16.msra.mxu0 %v694_v43 }
 0x340   :  { %1465 = vmatprep.subr.bf16.mxu0 %v695_v45 }
 0x343   :  { %1466 = vmatpush3.bf16.msra.mxu0 %v695_v45 }
 0x346   :  { %1468 = vmatmul.mubr.bf16.vlgmr.msra.gmra.mrb[16].mxu0 %v1734_v31 }
 0x347   :  { %1471 = vmatprep.mubr.bf16.mxu0 %v1739_v32 }
 0x34e   :  { %1472 = vmatmul.mubr.bf16.gmra.mrb[20].mxu0 %v1749_v34 }
 0x34f   :  { %1475 = vmatprep.mubr.bf16.mxu0 %v1754_v35 }
 0x356   :  { %1476 = vmatmul.mubr.bf16.gmra.mrb[24].mxu0 %v1761_v36 }
 0x357   :  { %1479 = vmatprep.mubr.bf16.mxu0 %v1766_v37 }
 0x35e   :  { %1480 = vmatmul.mubr.bf16.gmra.mrb[28].mxu0 %v1773_v38 }
 0x419   :  { %v1469_v0 = vpop.f32.mrb[16].mxu0 }
 0x41a   :  { %v730_v31 = vpop.f32.mrb[17].mxu0 }
 0x41b   :  { %v1470_v12 = vpop.f32.mrb[18].mxu0 }
 0x41c   :  { %v794_v32 = vpack.c.bf16 %v1470_v12, %v1469_v0  ;;  %v733_v22 = vpop.f32.mrb[19].mxu0 }
 0x41d   :  { %v793_v34 = vpack.c.bf16 %v733_v22, %v730_v31 }
 0x41f   :  { %1499 = vmatprep.mubr.bf16.mxu1 %v793_v34 }
 0x420   :  { %1500 = vmatmul.mubr.bf16.vlgmr.msra.gmra.mrb[16].mxu1 %v794_v32 }
 0x421   :  { %v1473_v35 = vpop.f32.mrb[20].mxu0 }
 0x422   :  { %v746_v36 = vpop.f32.mrb[21].mxu0 }
 0x423   :  { %v1474_v47 = vpop.f32.mrb[22].mxu0 }
 0x424   :  { %v796_v37 = vpack.c.bf16 %v1474_v47, %v1473_v35  ;;  %v749_v48 = vpop.f32.mrb[23].mxu0 }
 0x425   :  { %v795_v38 = vpack.c.bf16 %v749_v48, %v746_v36 }
 0x427   :  { %1503 = vmatprep.mubr.bf16.mxu1 %v795_v38 }
 0x428   :  { %1504 = vmatmul.mubr.bf16.gmra.mrb[20].mxu1 %v796_v37 }
 0x429   :  { %v1477_v46 = vpop.f32.mrb[24].mxu0 }
 0x42a   :  { %v762_v50 = vpop.f32.mrb[25].mxu0 }
 0x42b   :  { %v1478_v51 = vpop.f32.mrb[26].mxu0 }
 0x42c   :  { %v798_v1 = vpack.c.bf16 %v1478_v51, %v1477_v46  ;;  %v765_v49 = vpop.f32.mrb[27].mxu0 }
 0x42d   :  { %v797_v23 = vpack.c.bf16 %v765_v49, %v762_v50 }
 0x42f   :  { %1507 = vmatprep.mubr.bf16.mxu1 %v797_v23 }
 0x430   :  { %1508 = vmatmul.mubr.bf16.gmra.mrb[24].mxu1 %v798_v1 }
 0x431   :  { %v1481_v53 = vpop.f32.mrb[28].mxu0 }
 0x432   :  { %v778_v54 = vpop.f32.mrb[29].mxu0 }
 0x433   :  { %v1482_v24 = vpop.f32.mrb[30].mxu0 }
 0x434   :  { %v800_v5 = vpack.c.bf16 %v1482_v24, %v1481_v53  ;;  %v781_v58 = vpop.f32.mrb[31].mxu0 }
 0x435   :  { %v799_v61 = vpack.c.bf16 %v781_v58, %v778_v54 }
 0x437   :  { %1511 = vmatprep.mubr.bf16.mxu1 %v799_v61 }
 0x438   :  { %1512 = vmatmul.mubr.bf16.gmra.mrb[28].mxu1 %v800_v5 }
 0x4f3   :  { %v1501_v27 = vpop.f32.mrb[16].mxu1 }
 0x4f4   :  { %v914_v63 = vadd.f32 %v1501_v27, %v1311_v62  ;;  %v905_v30 = vpop.f32.mrb[17].mxu1 }
 0x4f5   :  { %v1502_v55 = vpop.f32.mrb[18].mxu1  ;;  %v906_v6 = vadd.f32 %v1311_v62, %v905_v30 }
 0x4f6   :  { %v917_v4 = vadd.f32 %v1502_v55, %v1311_v62  ;;  %972 = vadd.xlane.f32.xlu0 %v914_v63  ;;  %v908_v60 = vpop.f32.mrb[19].mxu1 }
 0x4f7   :  { %v2049_v7 = vadd.f32 %v1311_v62, %v908_v60 }
 0x4f8   :  { %974 = vadd.xlane.f32.xlu1 %v917_v4 }
 0x4fa   :  { %968 = vadd.xlane.f32.xlu0 %v906_v6 }
 0x4fb   :  { %v1505_v39 = vpop.f32.mrb[20].mxu1 }
 0x4fc   :  { %v2051_v11 = vadd.f32 %v1505_v39, %v1311_v62  ;;  %970 = vadd.xlane.f32.xlu1 %v2049_v7  ;;  %v921_v8 = vpop.f32.mrb[21].mxu1 }
 0x4fd   :  { %v1506_v52 = vpop.f32.mrb[22].mxu1  ;;  %v2057_v17 = vadd.f32 %v1311_v62, %v921_v8 }
 0x4fe   :  { %v2054_v9 = vadd.f32 %v1506_v52, %v1311_v62  ;;  %980 = vadd.xlane.f32.xlu0 %v2051_v11  ;;  %v924_v10 = vpop.f32.mrb[23].mxu1 }
 0x4ff   :  { %v2060_v13 = vadd.f32 %v1311_v62, %v924_v10 }
 0x500   :  { %982 = vadd.xlane.f32.xlu1 %v2054_v9 }
 0x502   :  { %976 = vadd.xlane.f32.xlu0 %v2057_v17 }
 0x503   :  { %v1509_v14 = vpop.f32.mrb[24].mxu1 }
 0x504   :  { %v2063_v2 = vadd.f32 %v1509_v14, %v1311_v62  ;;  %978 = vadd.xlane.f32.xlu1 %v2060_v13  ;;  %v937_v18 = vpop.f32.mrb[25].mxu1 }
 0x505   :  { %v1510_v20 = vpop.f32.mrb[26].mxu1  ;;  %v2069_v21 = vadd.f32 %v1311_v62, %v937_v18 }
 0x506   :  { %v2066_v3 = vadd.f32 %v1510_v20, %v1311_v62  ;;  %988 = vadd.xlane.f32.xlu0 %v2063_v2  ;;  %v940_v15 = vpop.f32.mrb[27].mxu1 }
 0x507   :  { %v2072_v26 = vadd.f32 %v1311_v62, %v940_v15 }
 0x508   :  { %990 = vadd.xlane.f32.xlu1 %v2066_v3 }
 0x50a   :  { %984 = vadd.xlane.f32.xlu0 %v2069_v21 }
 0x50b   :  { %v1513_v25 = vpop.f32.mrb[28].mxu1 }
 0x50c   :  { %986 = vadd.xlane.f32.xlu1 %v2072_v26  ;;  %v953_v16 = vpop.f32.mrb[29].mxu1  ;;  %v2081_v42 = vadd.f32 %v1513_v25, %v1311_v62 }
 0x50d   :  { %v2076_v59 = vadd.f32 %v1311_v62, %v953_v16  ;;  %v1514_v28 = vpop.f32.mrb[30].mxu1 }
 0x50e   :  { %v956_v29 = vpop.f32.mrb[31].mxu1  ;;  %v2084_v40 = vadd.f32 %v1514_v28, %v1311_v62 }
 0x50f   :  { %v2078_v33 = vadd.f32 %v1311_v62, %v956_v29  ;;  %992 = vadd.xlane.f32.xlu0 %v2076_v59 }
 0x511   :  { %994 = vadd.xlane.f32.xlu1 %v2078_v33 }
 0x513   :  { %996 = vadd.xlane.f32.xlu0 %v2081_v42 }
 0x515   :  { %998 = vadd.xlane.f32.xlu1 %v2084_v40 }
 0x583   :  { %v973_v43 = vpop.xlane.xlu0 %972 }
 0x584   :  { %v1002_v56 = vmul.f32 0.0625, %v973_v43 }
 0x585   :  { %v975_v19 = vpop.xlane.xlu1 %974 }
 0x586   :  { %v1019_v44 = vsub.f32 %v914_v63, %v1002_v56  ;;  %v1003_v45 = vmul.f32 0.0625, %v975_v19 }
 0x587   :  { %v969_v57 = vpop.xlane.xlu0 %968 }
 0x588   :  { %v1020_v0 = vsub.f32 %v917_v4, %v1003_v45  ;;  %v1000_v31 = vmul.f32 0.0625, %v969_v57  ;;  %v2091_v12 = vsel %vm1016_vm1, %v1019_v44, 0.0 }
 0x589   :  { %v971_v32 = vpop.xlane.xlu1 %970  ;;  %v1053_v22 = vmul.f32 %v2091_v12, %v2091_v12 }
 0x58a   :  { %v1017_v34 = vsub.f32 %v906_v6, %v1000_v31  ;;  %v1001_v35 = vmul.f32 0.0625, %v971_v32  ;;  %v2097_v36 = vsel %vm1016_vm1, %v1020_v0, 0.0 }
 0x58b   :  { %v981_v47 = vpop.xlane.xlu0 %980  ;;  %1071 = vadd.xlane.f32.xlu0 %v1053_v22  ;;  %v1054_v37 = vmul.f32 %v2097_v36, %v2097_v36 }
 0x58c   :  { %v1018_v48 = vsub.f32 %v2049_v7, %v1001_v35  ;;  %v1006_v38 = vmul.f32 0.0625, %v981_v47  ;;  %v2104_v46 = vsel %vm1016_vm1, %v1017_v34, 0.0 }
 0x58d   :  { %v983_v50 = vpop.xlane.xlu1 %982  ;;  %1073 = vadd.xlane.f32.xlu1 %v1054_v37  ;;  %v1051_v51 = vmul.f32 %v2104_v46, %v2104_v46 }
 0x58e   :  { %v1023_v1 = vsub.f32 %v2051_v11, %v1006_v38  ;;  %v1007_v49 = vmul.f32 0.0625, %v983_v50  ;;  %v2111_v23 = vsel %vm1016_vm1, %v1018_v48, 0.0 }
 0x58f   :  { %v977_v53 = vpop.xlane.xlu0 %976  ;;  %1067 = vadd.xlane.f32.xlu0 %v1051_v51  ;;  %v1052_v54 = vmul.f32 %v2111_v23, %v2111_v23 }
 0x590   :  { %v1024_v24 = vsub.f32 %v2054_v9, %v1007_v49  ;;  %v1004_v5 = vmul.f32 0.0625, %v977_v53  ;;  %v2118_v58 = vsel %vm1016_vm1, %v1023_v1, 0.0 }
 0x591   :  { %v979_v61 = vpop.xlane.xlu1 %978  ;;  %1069 = vadd.xlane.f32.xlu1 %v1052_v54  ;;  %v1057_v62 = vmul.f32 %v2118_v58, %v2118_v58 }
 0x592   :  { %v1021_v27 = vsub.f32 %v2057_v17, %v1004_v5  ;;  %v1005_v63 = vmul.f32 0.0625, %v979_v61  ;;  %v2125_v30 = vsel %vm1016_vm1, %v1024_v24, 0.0 }
 0x593   :  { %v989_v55 = vpop.xlane.xlu0 %988  ;;  %1079 = vadd.xlane.f32.xlu0 %v1057_v62  ;;  %v1058_v4 = vmul.f32 %v2125_v30, %v2125_v30 }
 0x594   :  { %v1022_v60 = vsub.f32 %v2060_v13, %v1005_v63  ;;  %v1010_v6 = vmul.f32 0.0625, %v989_v55  ;;  %v2132_v7 = vsel %vm1016_vm1, %v1021_v27, 0.0 }
 0x595   :  { %v991_v39 = vpop.xlane.xlu1 %990  ;;  %1081 = vadd.xlane.f32.xlu1 %v1058_v4  ;;  %v1055_v11 = vmul.f32 %v2132_v7, %v2132_v7 }
 0x596   :  { %v1027_v8 = vsub.f32 %v2063_v2, %v1010_v6  ;;  %v1011_v52 = vmul.f32 0.0625, %v991_v39  ;;  %v2139_v9 = vsel %vm1016_vm1, %v1022_v60, 0.0 }
 0x597   :  { %v985_v10 = vpop.xlane.xlu0 %984  ;;  %1075 = vadd.xlane.f32.xlu0 %v1055_v11  ;;  %v1056_v17 = vmul.f32 %v2139_v9, %v2139_v9 }
 0x598   :  { %v1028_v13 = vsub.f32 %v2066_v3, %v1011_v52  ;;  %v1008_v14 = vmul.f32 0.0625, %v985_v10  ;;  %v2146_v18 = vsel %vm1016_vm1, %v1027_v8, 0.0 }
 0x599   :  { %v987_v20 = vpop.xlane.xlu1 %986  ;;  %1077 = vadd.xlane.f32.xlu1 %v1056_v17  ;;  %v1061_v2 = vmul.f32 %v2146_v18, %v2146_v18 }
 0x59a   :  { %v1025_v15 = vsub.f32 %v2069_v21, %v1008_v14  ;;  %v1009_v25 = vmul.f32 0.0625, %v987_v20  ;;  %v2153_v16 = vsel %vm1016_vm1, %v1028_v13, 0.0  ;;  %v2201_v13 = vld [vmem:[%s2326_s4 + $0x1] ss:$0 sm:$0xff] }
 0x59b   :  { %1087 = vadd.xlane.f32.xlu0 %v1061_v2  ;;  %v1062_v3 = vmul.f32 %v2153_v16, %v2153_v16 }
 0x59c   :  { %v1026_v28 = vsub.f32 %v2072_v26, %v1009_v25  ;;  %v993_v29 = vpop.xlane.xlu0 %992  ;;  %v2160_v43 = vsel %vm1016_vm1, %v1025_v15, 0.0 }
 0x59d   :  { %v1012_v56 = vmul.f32 0.0625, %v993_v29  ;;  %1089 = vadd.xlane.f32.xlu1 %v1062_v3  ;;  %v1059_v21 = vmul.f32 %v2160_v43, %v2160_v43  ;;  %v2207_v3 = vld [vmem:[%s2327_s5 + $0x1] ss:$0 sm:$0xff] }
 0x59e   :  { %v995_v19 = vpop.xlane.xlu1 %994  ;;  %v2166_v44 = vsel %vm1016_vm1, %v1026_v28, 0.0 }
 0x59f   :  { %v1029_v45 = vsub.f32 %v2076_v59, %v1012_v56  ;;  %v1013_v57 = vmul.f32 0.0625, %v995_v19  ;;  %1083 = vadd.xlane.f32.xlu0 %v1059_v21  ;;  %v1060_v26 = vmul.f32 %v2166_v44, %v2166_v44 }
 0x5a0   :  { %v997_v0 = vpop.xlane.xlu0 %996 }
 0x5a1   :  { %v1030_v31 = vsub.f32 %v2078_v33, %v1013_v57  ;;  %v1014_v32 = vmul.f32 0.0625, %v997_v0  ;;  %1085 = vadd.xlane.f32.xlu1 %v1060_v26  ;;  %v2174_v22 = vsel %vm1016_vm1, %v1029_v45, 0.0  ;;  %v2211_v57 = vstv %s1322_s3 }
 0x5a2   :  { %v999_v34 = vpop.xlane.xlu1 %998  ;;  %v1063_v35 = vmul.f32 %v2174_v22, %v2174_v22 }
 0x5a3   :  { %v1031_v59 = vsub.f32 %v2081_v42, %v1014_v32  ;;  %v1015_v47 = vmul.f32 0.0625, %v999_v34  ;;  %v2181_v37 = vsel %vm1016_vm1, %v1030_v31, 0.0 }
 0x5a4   :  { %1091 = vadd.xlane.f32.xlu0 %v1063_v35  ;;  %v1064_v33 = vmul.f32 %v2181_v37, %v2181_v37 }
 0x5a5   :  { %v1032_v48 = vsub.f32 %v2084_v40, %v1015_v47  ;;  %v2188_v38 = vsel %vm1016_vm1, %v1031_v59, 0.0 }
 0x5a6   :  { %1093 = vadd.xlane.f32.xlu1 %v1064_v33  ;;  %v1065_v50 = vmul.f32 %v2188_v38, %v2188_v38 }
 0x5a7   :  { %v2194_v42 = vsel %vm1016_vm1, %v1032_v48, 0.0 }
 0x5a8   :  { %1095 = vadd.xlane.f32.xlu0 %v1065_v50  ;;  %v1066_v51 = vmul.f32 %v2194_v42, %v2194_v42 }
 0x5aa   :  { %1097 = vadd.xlane.f32.xlu1 %v1066_v51 }
 0x618   :  { %v1072_v1 = vpop.xlane.xlu0 %1071 }
 0x619   :  { %v1101_v49 = vmul.f32 0.0625, %v1072_v1 }
 0x61a   :  { %v1074_v40 = vpop.xlane.xlu1 %1073 }
 0x61b   :  { %v1117_v53 = vadd.f32 1e-05, %v1101_v49  ;;  %v1102_v54 = vmul.f32 0.0625, %v1074_v40 }
 0x61c   :  { %v1068_v24 = vpop.xlane.xlu0 %1067 }
 0x61d   :  { %1572 = vrsqrt.f32 %v1117_v53  ;;  %v1118_v5 = vadd.f32 1e-05, %v1102_v54  ;;  %v1099_v61 = vmul.f32 0.0625, %v1068_v24 }
 0x61e   :  { %v1070_v62 = vpop.xlane.xlu1 %1069 }
 0x61f   :  { %1574 = vrsqrt.f32 %v1118_v5  ;;  %v1115_v27 = vadd.f32 1e-05, %v1099_v61  ;;  %v1100_v41 = vmul.f32 0.0625, %v1070_v62 }
 0x620   :  { %v1080_v63 = vpop.xlane.xlu0 %1079 }
 0x621   :  { %1576 = vrsqrt.f32 %v1115_v27  ;;  %v1116_v55 = vadd.f32 1e-05, %v1100_v41  ;;  %v1105_v4 = vmul.f32 0.0625, %v1080_v63 }
 0x622   :  { %v1082_v60 = vpop.xlane.xlu1 %1081 }
 0x623   :  { %1578 = vrsqrt.f32 %v1116_v55  ;;  %v1121_v6 = vadd.f32 1e-05, %v1105_v4  ;;  %v1106_v39 = vmul.f32 0.0625, %v1082_v60 }
 0x624   :  { %v1076_v11 = vpop.xlane.xlu0 %1075 }
 0x625   :  { %1580 = vrsqrt.f32 %v1121_v6  ;;  %v1122_v8 = vadd.f32 1e-05, %v1106_v39  ;;  %v1103_v52 = vmul.f32 0.0625, %v1076_v11 }
 0x626   :  { %v1078_v10 = vpop.xlane.xlu1 %1077 }
 0x627   :  { %v1573_v17 = vpop.eup %1572  ;;  %1582 = vrsqrt.f32 %v1122_v8  ;;  %v1119_v14 = vadd.f32 1e-05, %v1103_v52  ;;  %v1104_v20 = vmul.f32 0.0625, %v1078_v10 }
 0x628   :  { %v1149_v2 = vmul.f32 %v1573_v17, %v2091_v12  ;;  %v1088_v15 = vpop.xlane.xlu0 %1087 }
 0x629   :  { %v1575_v25 = vpop.eup %1574  ;;  %1584 = vrsqrt.f32 %v1119_v14  ;;  %v1120_v28 = vadd.f32 1e-05, %v1104_v20  ;;  %v1109_v29 = vmul.f32 0.0625, %v1088_v15 }
 0x62a   :  { %v1170_v56 = vmul.f32 %v2201_v13, %v1149_v2  ;;  %v1150_v21 = vmul.f32 %v1575_v25, %v2097_v36  ;;  %v1090_v19 = vpop.xlane.xlu1 %1089 }
 0x62b   :  { %v1577_v45 = vpop.eup %1576  ;;  %1586 = vrsqrt.f32 %v1120_v28  ;;  %v1125_v12 = vadd.f32 1e-05, %v1109_v29  ;;  %v1110_v26 = vmul.f32 0.0625, %v1090_v19 }
 0x62c   :  { %v1191_v0 = vadd.f32 %v2207_v3, %v1170_v56  ;;  %v1171_v31 = vmul.f32 %v2201_v13, %v1150_v21  ;;  %v1147_v32 = vmul.f32 %v1577_v45, %v2104_v46  ;;  %v1084_v34 = vpop.xlane.xlu0 %1083 }
 0x62d   :  { %v1579_v35 = vpop.eup %1578  ;;  %1588 = vrsqrt.f32 %v1125_v12  ;;  %v1126_v59 = vadd.f32 1e-05, %v1110_v26  ;;  %v1107_v47 = vmul.f32 0.0625, %v1084_v34 }
 0x62e   :  { %vm1208_vm2 = vcmp.ge.f32.partialorder %v1191_v0, 0.0  ;;  %v1225_v36 = vmul.f32 %v2211_v57, %v1191_v0  ;;  %v1192_v33 = vadd.f32 %v2207_v3, %v1171_v31  ;;  %v1168_v48 = vmul.f32 %v2201_v13, %v1147_v32  ;;  %v1086_v50 = vpop.xlane.xlu1 %1085 }
 0x62f   :  { %v1581_v51 = vpop.eup %1580  ;;  %v1148_v1 = vmul.f32 %v1579_v35, %v2111_v23  ;;  %1590 = vrsqrt.f32 %v1126_v59  ;;  %v1123_v49 = vadd.f32 1e-05, %v1107_v47  ;;  %v1108_v40 = vmul.f32 0.0625, %v1086_v50 }
 0x630   :  { %v1241_v46 = vsel %vm1208_vm2, %v1191_v0, %v1225_v36  ;;  %vm1209_vm3 = vcmp.ge.f32.partialorder %v1192_v33, 0.0  ;;  %v1226_v53 = vmul.f32 %v2211_v57, %v1192_v33  ;;  %v1189_v54 = vadd.f32 %v2207_v3, %v1168_v48 }
 0x631   :  { %v1583_v24 = vpop.eup %1582  ;;  %1257 = vst [vmem:[%s2329_s7 + $0x10] sm:$0xff] %v1241_v46  ;;  %v1169_v5 = vmul.f32 %v2201_v13, %v1148_v1  ;;  %v1153_v61 = vmul.f32 %v1581_v51, %v2118_v58  ;;  %1592 = vrsqrt.f32 %v1123_v49  ;;  %v1124_v23 = vadd.f32 1e-05, %v1108_v40  ;;  %v1092_v62 = vpop.xlane.xlu0 %1091 }
 0x632   :  { %v1242_v27 = vsel %vm1209_vm3, %v1192_v33, %v1226_v53  ;;  %vm1206_vm4 = vcmp.ge.f32.partialorder %v1189_v54, 0.0  ;;  %v1223_v41 = vmul.f32 %v2211_v57, %v1189_v54  ;;  %v1154_v63 = vmul.f32 %v1583_v24, %v2125_v30 }
 0x633   :  { %v1585_v55 = vpop.eup %1584  ;;  %1258 = vst [vmem:[%s2329_s7 + $0x18] sm:$0xff] %v1242_v27  ;;  %v1190_v4 = vadd.f32 %v2207_v3, %v1169_v5  ;;  %v1174_v60 = vmul.f32 %v2201_v13, %v1153_v61  ;;  %1594 = vrsqrt.f32 %v1124_v23  ;;  %v1111_v58 = vmul.f32 0.0625, %v1092_v62  ;;  %v1094_v6 = vpop.xlane.xlu1 %1093 }
 0x634   :  { %v1239_v39 = vsel %vm1206_vm4, %v1189_v54, %v1223_v41  ;;  %v1175_v11 = vmul.f32 %v2201_v13, %v1154_v63  ;;  %v1151_v8 = vmul.f32 %v1585_v55, %v2132_v7  ;;  %v1112_v52 = vmul.f32 0.0625, %v1094_v6 }
 0x635   :  { %v1587_v10 = vpop.eup %1586  ;;  %1255 = vst [vmem:[%s2329_s7] sm:$0xff] %v1239_v39  ;;  %vm1207_vm5 = vcmp.ge.f32.partialorder %v1190_v4, 0.0  ;;  %v1224_v30 = vmul.f32 %v2211_v57, %v1190_v4  ;;  %v1195_v17 = vadd.f32 %v2207_v3, %v1174_v60  ;;  %v1127_v14 = vadd.f32 1e-05, %v1111_v58  ;;  %v1096_v7 = vpop.xlane.xlu0 %1095 }
 0x636   :  { %v1196_v20 = vadd.f32 %v2207_v3, %v1175_v11  ;;  %v1172_v2 = vmul.f32 %v2201_v13, %v1151_v8  ;;  %v1152_v15 = vmul.f32 %v1587_v10, %v2139_v9  ;;  %v1128_v25 = vadd.f32 1e-05, %v1112_v52 }
 0x637   :  { %v1589_v28 = vpop.eup %1588  ;;  %v1240_v29 = vsel %vm1207_vm5, %v1190_v4, %v1224_v30  ;;  %vm1212_vm6 = vcmp.ge.f32.partialorder %v1195_v17, 0.0  ;;  %v1229_v56 = vmul.f32 %v2211_v57, %v1195_v17  ;;  %1596 = vrsqrt.f32 %v1127_v14  ;;  %v1098_v9 = vpop.xlane.xlu1 %1097 }
 0x638   :  { %1256 = vst [vmem:[%s2329_s7 + $0x8] sm:$0xff] %v1240_v29  ;;  %vm1213_vm7 = vcmp.ge.f32.partialorder %v1196_v20, 0.0  ;;  %v1230_v21 = vmul.f32 %v2211_v57, %v1196_v20  ;;  %v1193_v19 = vadd.f32 %v2207_v3, %v1172_v2  ;;  %v1173_v45 = vmul.f32 %v2201_v13, %v1152_v15 }
 0x639   :  { %v1591_v12 = vpop.eup %1590  ;;  %v1245_v26 = vsel %vm1212_vm6, %v1195_v17, %v1229_v56  ;;  %v1157_v0 = vmul.f32 %v1589_v28, %v2146_v18  ;;  %1598 = vrsqrt.f32 %v1128_v25  ;;  %v1113_v31 = vmul.f32 0.0625, %v1096_v7 }
 0x63a   :  { %1261 = vst [vmem:[%s2329_s7 + $0x30] sm:$0xff] %v1245_v26  ;;  %v1246_v32 = vsel %vm1213_vm7, %v1196_v20, %v1230_v21  ;;  %vm1210_vm8 = vcmp.ge.f32.partialorder %v1193_v19, 0.0  ;;  %v1227_v34 = vmul.f32 %v2211_v57, %v1193_v19  ;;  %v1194_v35 = vadd.f32 %v2207_v3, %v1173_v45 }
 0x63b   :  { %v1593_v59 = vpop.eup %1592  ;;  %1262 = vst [vmem:[%s2329_s7 + $0x38] sm:$0xff] %v1246_v32  ;;  %v1178_v47 = vmul.f32 %v2201_v13, %v1157_v0  ;;  %v1158_v18 = vmul.f32 %v1591_v12, %v2153_v16  ;;  %v1129_v36 = vadd.f32 1e-05, %v1113_v31  ;;  %v1114_v33 = vmul.f32 0.0625, %v1098_v9 }
 0x63c   :  { %v1243_v48 = vsel %vm1210_vm8, %v1193_v19, %v1227_v34  ;;  %vm1211_vm9 = vcmp.ge.f32.partialorder %v1194_v35, 0.0  ;;  %v1228_v50 = vmul.f32 %v2211_v57, %v1194_v35  ;;  %v1155_v51 = vmul.f32 %v1593_v59, %v2160_v43 }
 0x63d   :  { %v1595_v1 = vpop.eup %1594  ;;  %1259 = vst [vmem:[%s2329_s7 + $0x20] sm:$0xff] %v1243_v48  ;;  %v1199_v49 = vadd.f32 %v2207_v3, %v1178_v47  ;;  %v1179_v40 = vmul.f32 %v2201_v13, %v1158_v18  ;;  %1600 = vrsqrt.f32 %v1129_v36  ;;  %v1130_v46 = vadd.f32 1e-05, %v1114_v33 }
 0x63e   :  { %v1244_v16 = vsel %vm1211_vm9, %v1194_v35, %v1228_v50  ;;  %v1176_v53 = vmul.f32 %v2201_v13, %v1155_v51  ;;  %v1156_v54 = vmul.f32 %v1595_v1, %v2166_v44 }
 0x63f   :  { %1260 = vst [vmem:[%s2329_s7 + $0x28] sm:$0xff] %v1244_v16  ;;  %vm1216_vm10 = vcmp.ge.f32.partialorder %v1199_v49, 0.0  ;;  %v1233_v43 = vmul.f32 %v2211_v57, %v1199_v49  ;;  %v1200_v24 = vadd.f32 %v2207_v3, %v1179_v40  ;;  %1602 = vrsqrt.f32 %v1130_v46 }
 0x640   :  { %v1197_v5 = vadd.f32 %v2207_v3, %v1176_v53  ;;  %v1177_v61 = vmul.f32 %v2201_v13, %v1156_v54 }
 0x641   :  { %v1597_v23 = vpop.eup %1596  ;;  %v1249_v62 = vsel %vm1216_vm10, %v1199_v49, %v1233_v43  ;;  %vm1217_vm11 = vcmp.ge.f32.partialorder %v1200_v24, 0.0  ;;  %v1234_v27 = vmul.f32 %v2211_v57, %v1200_v24 }
 0x642   :  { %1265 = vst [vmem:[%s2329_s7 + $0x50] sm:$0xff] %v1249_v62  ;;  %vm1214_vm12 = vcmp.ge.f32.partialorder %v1197_v5, 0.0  ;;  %v1231_v44 = vmul.f32 %v2211_v57, %v1197_v5  ;;  %v1198_v41 = vadd.f32 %v2207_v3, %v1177_v61  ;;  %v1159_v63 = vmul.f32 %v1597_v23, %v2174_v22 }
 0x643   :  { %v1599_v55 = vpop.eup %1598  ;;  %v1250_v4 = vsel %vm1217_vm11, %v1200_v24, %v1234_v27 }
 0x644   :  { %1266 = vst [vmem:[%s2329_s7 + $0x58] sm:$0xff] %v1250_v4  ;;  %v1247_v60 = vsel %vm1214_vm12, %v1197_v5, %v1231_v44  ;;  %vm1215_vm13 = vcmp.ge.f32.partialorder %v1198_v41, 0.0  ;;  %v1232_v58 = vmul.f32 %v2211_v57, %v1198_v41  ;;  %v1180_v6 = vmul.f32 %v2201_v13, %v1159_v63 }
 0x645   :  { %1263 = vst [vmem:[%s2329_s7 + $0x40] sm:$0xff] %v1247_v60  ;;  %v1160_v39 = vmul.f32 %v1599_v55, %v2181_v37 }
 0x646   :  { %v1248_v11 = vsel %vm1215_vm13, %v1198_v41, %v1232_v58  ;;  %v1201_v22 = vadd.f32 %v2207_v3, %v1180_v6 }
 0x647   :  { %v1601_v8 = vpop.eup %1600  ;;  %1264 = vst [vmem:[%s2329_s7 + $0x48] sm:$0xff] %v1248_v11  ;;  %v1181_v52 = vmul.f32 %v2201_v13, %v1160_v39 }
 0x648   :  { %vm1218_vm14 = vcmp.ge.f32.partialorder %v1201_v22, 0.0  ;;  %v1235_v10 = vmul.f32 %v2211_v57, %v1201_v22  ;;  %v1161_v30 = vmul.f32 %v1601_v8, %v2188_v38 }
 0x649   :  { %v1603_v17 = vpop.eup %1602  ;;  %v1202_v14 = vadd.f32 %v2207_v3, %v1181_v52 }
 0x64a   :  { %v1251_v20 = vsel %vm1218_vm14, %v1201_v22, %v1235_v10  ;;  %v1182_v37 = vmul.f32 %v2201_v13, %v1161_v30  ;;  %v1162_v2 = vmul.f32 %v1603_v17, %v2194_v42 }
 0x64b   :  { %1267 = vst [vmem:[%s2329_s7 + $0x60] sm:$0xff] %v1251_v20  ;;  %vm1219_vm15 = vcmp.ge.f32.partialorder %v1202_v14, 0.0  ;;  %v1236_v15 = vmul.f32 %v2211_v57, %v1202_v14 }
 0x64c   :  { %v1203_v25 = vadd.f32 %v2207_v3, %v1182_v37  ;;  %v1183_v7 = vmul.f32 %v2201_v13, %v1162_v2 }
 0x64d   :  { %v1252_v38 = vsel %vm1219_vm15, %v1202_v14, %v1236_v15 }
 0x64e   :  { %1268 = vst [vmem:[%s2329_s7 + $0x68] sm:$0xff] %v1252_v38  ;;  %vm1220_vm0 = vcmp.ge.f32.partialorder %v1203_v25, 0.0  ;;  %v1237_v28 = vmul.f32 %v2211_v57, %v1203_v25  ;;  %v1204_v42 = vadd.f32 %v2207_v3, %v1183_v7 }
 0x650   :  { %v1253_v29 = vsel %vm1220_vm0, %v1203_v25, %v1237_v28  ;;  %vm1221_vm1 = vcmp.ge.f32.partialorder %v1204_v42, 0.0  ;;  %v1238_v56 = vmul.f32 %v2211_v57, %v1204_v42 }
 0x651   :  { %1269 = vst [vmem:[%s2329_s7 + $0x70] sm:$0xff] %v1253_v29 }
 0x652   :  { %v1254_v21 = vsel %vm1221_vm1, %v1204_v42, %v1238_v56 }
 0x653   :  { %1270 = vst [vmem:[%s2329_s7 + $0x78] sm:$0xff] %v1254_v21 }
 0x654   :  { %1275 = vsyncpa [#allocation3], 1 }

</bundles_post_ra>
